<compile_context>
chip_gen: v6e
topology: v6e:2x2x1
jax: 0.10.0
libtpu: 0.0.40
codegen_flags: <defaults>
</compile_context>

<pallas_src>
import jax
import jax.numpy as jnp
import numpy as np
from jax import lax
from jax.experimental import pallas as pl
from jax.experimental.pallas import tpu as pltpu

_LANES = 128          # vreg lane width == lane stride of every padded row
_NEG = -1.0e30        # max-pool border sentinel (never wins a 3x3 window)


# ----------------------------------------------------------------------------
# Fused kernel
# ----------------------------------------------------------------------------
def _make_fused_kernel(nb, H, W, Cin, Cout):
    H2, W2 = H // 2, W // 2
    Lx = W * Cin                   # live lanes of a stem input row   (<= 128)
    Lp = W2 * Cout                 # live lanes of a residual row     (<= 128)
    WCo = W * Cout                 # lane width of the stem conv output

    def conv(rows_ref, Hc, wmat, bias):
        """3x3 'same' conv as ONE banded matmul.

        rows_ref: (nb, Hc+2, 128) zero-padded scratch; row r>=1 holds image
        row r-1 lane-dense as w*C+c, rows 0 / Hc+1 and lanes past the image
        are zero.  The 3 kh taps are three sublane-shifted views concatenated
        on the lane axis at vreg boundaries; kw taps + horizontal zero padding
        live inside `wmat` (3*128, Wout*Cout), so the conv is a single MXU dot
        with K=384.
        """
        r = rows_ref[...]
        a = jnp.concatenate(
            [r[:, 0:Hc, :], r[:, 1:Hc + 1, :], r[:, 2:Hc + 2, :]], axis=-1)
        a = a.reshape(nb * Hc, 3 * _LANES)
        return jnp.dot(a, wmat, preferred_element_type=jnp.float32) + bias

    def kernel(x_ref, ws_ref, bs_ref, sel_ref, wr_ref, br_ref, o_ref,
               xrows, prows):
        # ---- stem conv ------------------------------------------------------
        # Zero once per step; only the interiors below are ever rewritten, so
        # borders / spare lanes stay zero for the whole body.
        xrows[...] = jnp.zeros(xrows.shape, jnp.float32)
        xrows[:, 1:H + 1, :Lx] = x_ref[...]
        a = conv(xrows, H, ws_ref[...], bs_ref[...])          # (nb*H, W*Cout)

        # ---- max-pool 3x3 / stride 2 / pad 1 --------------------------------
        # Width: dense 3-tap running max on 128-lane rows, then ONE tiny dot
        # with a constant 0/1 matrix picks the even columns (channel kept).
        negc = jnp.full((nb * H, Cout), _NEG, jnp.float32)
        left = jnp.concatenate([negc, a[:, :WCo - Cout]], axis=-1)    # col w-1
        right = jnp.concatenate([a[:, Cout:], negc], axis=-1)         # col w+1
        dense = jnp.maximum(jnp.maximum(a, left), right)              # (nb*H, WCo)
        colmax = jnp.dot(dense, sel_ref[...],
                         preferred_element_type=jnp.float32)          # (nb*H, Lp)
        # Height: even/odd row parity (pure sublane regrouping).
        cp = colmax.reshape(nb, H2, 2, Lp)
        ce = cp[:, :, 0, :]                                           # rows 2i
        codd = cp[:, :, 1, :]                                         # rows 2i+1
        cprev = jnp.concatenate(
            [jnp.full((nb, 1, Lp), _NEG, jnp.float32), codd[:, :H2 - 1, :]],
            axis=1)                                                   # rows 2i-1
        p = jnp.maximum(jnp.maximum(ce, codd), cprev)                 # (nb, H2, Lp)

        # ---- two residual blocks, fully VMEM resident -----------------------
        # relu(pad0(x)) == pad0(relu(x)): ReLU is applied while writing the
        # padded scratch interior; the zero borders are reused by all 4 convs.
        prows[...] = jnp.zeros(prows.shape, jnp.float32)
        for blk in range(2):
            prows[:, 1:H2 + 1, :Lp] = jnp.maximum(p, 0.0)
            h = conv(prows, H2, wr_ref[2 * blk], br_ref[2 * blk])
            prows[:, 1:H2 + 1, :Lp] = jnp.maximum(h, 0.0).reshape(nb, H2, Lp)
            y = conv(prows, H2, wr_ref[2 * blk + 1], br_ref[2 * blk + 1])
            p = y.reshape(nb, H2, Lp) + p

        # Lane-dense (W2*Cout wide) store; NCHW unpacking stays in the wrapper.
        o_ref[...] = p

    return kernel


# ----------------------------------------------------------------------------
# Host-side weight prep (traceable; only static numpy constants are used)
# ----------------------------------------------------------------------------
def _banded_weight(w_oihw, w_img):
    """OIHW 3x3 weight -> (3*_LANES, w_img*Cout) banded matmul weight.

    Row kh*_LANES + wi*Cin + ci multiplies input pixel (row h+kh-1, col wi,
    chan ci); column wo*Cout + co is output (col wo, chan co).  Horizontal
    zero padding is implicit: taps with wi outside [0, w_img) stay zero.
    """
    cout, cin, kh, kw = w_oihw.shape
    wlane = _LANES // cin
    sel = np.zeros((kw, wlane, w_img), np.float32)
    for k in range(kw):
        for wo in range(w_img):
            wi = wo + k - 1
            if 0 <= wi < w_img:
                sel[k, wi, wo] = 1.0
    wt = jnp.transpose(w_oihw, (2, 3, 1, 0))                  # (kh, kw, ci, co)
    band = jnp.einsum('kxw,hkio->hxiwo', jnp.asarray(sel), wt)
    return band.reshape(kh * _LANES, w_img * cout)


def _pool_select(W, Cout):
    """(W*Cout, (W//2)*Cout) 0/1 matrix: keep even columns, preserve channels."""
    W2 = W // 2
    S = np.zeros((W * Cout, W2 * Cout), np.float32)
    for j in range(W2):
        for c in range(Cout):
            S[(2 * j) * Cout + c, j * Cout + c] = 1.0
    return jnp.asarray(S)


def _pick_batch_block(N):
    # Fold samples per grid step to amortize fixed per-step overhead, but keep
    # >= 2 grid steps so both v7x TensorCores get work.
    if N <= 2:
        return 1
    for nb in (32, 16, 8, 4, 2):
        if N % nb == 0 and N // nb >= 2:
            return nb
    return 1


# ----------------------------------------------------------------------------
# Wrapper (NCHW in / NCHW out, PyTorch weight convention)
# ----------------------------------------------------------------------------
def conv_sequence_forward(x_nchw, params, batch_block=None):
    N, Cin, H, W = x_nchw.shape
    Cout = params["conv"][0].shape[0]
    H2, W2 = H // 2, W // 2
    assert H % 2 == 0 and W % 2 == 0, "even spatial dims assumed"
    assert _LANES % Cin == 0 and _LANES % Cout == 0
    assert W * Cin <= _LANES and W2 * Cout <= _LANES, "row must fit in 128 lanes"

    nb = batch_block if batch_block is not None else _pick_batch_block(N)
    assert N % nb == 0

    # Lane-dense kernel I/O.
    x_rows = jnp.transpose(x_nchw, (0, 2, 3, 1)).reshape(N, H, W * Cin)

    w_stem = _banded_weight(params["conv"][0], W)             # (384, W*Cout)
    b_stem = jnp.tile(params["conv"][1], W)[None, :]          # (1, W*Cout)
    sel = _pool_select(W, Cout)                               # (W*Cout, W2*Cout)
    res = ("r0c0", "r0c1", "r1c0", "r1c1")
    w_res = jnp.stack([_banded_weight(params[k][0], W2) for k in res])
    b_res = jnp.stack([jnp.tile(params[k][1], W2)[None, :] for k in res])

    out = pl.pallas_call(
        _make_fused_kernel(nb, H, W, Cin, Cout),
        out_shape=jax.ShapeDtypeStruct((N, H2, W2 * Cout), jnp.float32),
        grid=(N // nb,),
        in_specs=[
            pl.BlockSpec((nb, H, W * Cin), lambda n: (n, 0, 0)),
            pl.BlockSpec((3 * _LANES, W * Cout), lambda n: (0, 0)),
            pl.BlockSpec((1, W * Cout), lambda n: (0, 0)),
            pl.BlockSpec((W * Cout, W2 * Cout), lambda n: (0, 0)),
            pl.BlockSpec((4, 3 * _LANES, W2 * Cout), lambda n: (0, 0, 0)),
            pl.BlockSpec((4, 1, W2 * Cout), lambda n: (0, 0, 0)),
        ],
        out_specs=pl.BlockSpec((nb, H2, W2 * Cout), lambda n: (n, 0, 0)),
        scratch_shapes=[
            pltpu.VMEM((nb, H + 2, _LANES), jnp.float32),     # padded stem rows
            pltpu.VMEM((nb, H2 + 2, _LANES), jnp.float32),    # padded res rows
        ],
        compiler_params=pltpu.CompilerParams(
            dimension_semantics=("parallel",)),
    )(x_rows, w_stem, b_stem, sel, w_res, b_res)

    return jnp.transpose(out.reshape(N, H2, W2, Cout), (0, 3, 1, 2))


# ----------------------------------------------------------------------------
# Parameters
# ----------------------------------------------------------------------------
def init_params(key, in_channels, out_channels):
    def conv_init(k, cin, cout):
        k1, k2 = jax.random.split(k)
        bound = 1.0 / np.sqrt(cin * 9)  # PyTorch-default-like uniform init
        w = jax.random.uniform(k1, (cout, cin, 3, 3), jnp.float32, -bound, bound)
        b = jax.random.uniform(k2, (cout,), jnp.float32, -bound, bound)
        return w, b

    keys = jax.random.split(key, 5)
    return {
        "conv": conv_init(keys[0], in_channels, out_channels),
        "r0c0": conv_init(keys[1], out_channels, out_channels),
        "r0c1": conv_init(keys[2], out_channels, out_channels),
        "r1c0": conv_init(keys[3], out_channels, out_channels),
        "r1c1": conv_init(keys[4], out_channels, out_channels),
    }


# ----------------------------------------------------------------------------
# Pure-JAX reference (mirrors the PyTorch forward) for a correctness check.
# ----------------------------------------------------------------------------
def _conv_ref(x, w, b):
    y = lax.conv_general_dilated(
        x, w, (1, 1), ((1, 1), (1, 1)),
        dimension_numbers=("NCHW", "OIHW", "NCHW"),
        precision=lax.Precision.HIGHEST)
    return y + b[None, :, None, None]


def conv_sequence_ref(x, params):
    w, b = params["conv"]
    x = _conv_ref(x, w, b)
    x = lax.reduce_window(x, -jnp.inf, lax.max, (1, 1, 3, 3), (1, 1, 2, 2),
                          ((0, 0), (0, 0), (1, 1), (1, 1)))
    for blk in ("r0", "r1"):
        w0, b0 = params[blk + "c0"]
        w1, b1 = params[blk + "c1"]
        h = _conv_ref(jax.nn.relu(x), w0, b0)
        x = _conv_ref(jax.nn.relu(h), w1, b1) + x
    return x


if __name__ == "__main__":
    key = jax.random.PRNGKey(0)
    k_x, k_p = jax.random.split(key)

    N, C, H, W = 2, 4, 16, 16          # input_shape = (4, 16, 16), batch = 2
    out_channels = 8
    x = jax.random.normal(k_x, (N, C, H, W), jnp.float32)
    params = init_params(k_p, C, out_channels)

    out = jax.jit(conv_sequence_forward)(x, params)
    out = jax.block_until_ready(out)

    # ConvSequence.get_output_shape() == (out_channels, (H+1)//2, (W+1)//2)
    assert out.shape == (N, out_channels, (H + 1) // 2, (W + 1) // 2), out.shape

    ref = conv_sequence_ref(x, params)
    np.testing.assert_allclose(np.asarray(out), np.asarray(ref),
                               rtol=1e-3, atol=1e-3)
    print("KERNEL_OK")
</pallas_src>

<mosaic_0001>
module attributes {stable_mosaic.version = 11 : i64} {
  func.func @kernel(%arg0: i32, %arg1: memref<1x16x64xf32, #tpu.memory_space<vmem>>, %arg2: memref<384x128xf32, #tpu.memory_space<vmem>>, %arg3: memref<1x128xf32, #tpu.memory_space<vmem>>, %arg4: memref<128x64xf32, #tpu.memory_space<vmem>>, %arg5: memref<4x384x64xf32, #tpu.memory_space<vmem>>, %arg6: memref<4x1x64xf32, #tpu.memory_space<vmem>>, %arg7: memref<1x8x64xf32, #tpu.memory_space<vmem>>, %arg8: memref<1x18x128xf32, #tpu.memory_space<vmem>>, %arg9: memref<1x10x128xf32, #tpu.memory_space<vmem>>) attributes {dimension_semantics = [#tpu.dimension_semantics<parallel>], iteration_bounds = array<i64: 2>, scalar_prefetch = 0 : i64, scratch_operands = 2 : i64, tpu.core_type = #tpu.core_type<tc>, window_params = [{transform_indices = @transform_0, window_bounds = array<i64: 1, 16, 64>}, {pipeline_mode = #tpu.pipeline_mode<synchronous>, transform_indices = @transform_1, window_bounds = array<i64: 384, 128>}, {pipeline_mode = #tpu.pipeline_mode<synchronous>, transform_indices = @transform_2, window_bounds = array<i64: 1, 128>}, {pipeline_mode = #tpu.pipeline_mode<synchronous>, transform_indices = @transform_3, window_bounds = array<i64: 128, 64>}, {pipeline_mode = #tpu.pipeline_mode<synchronous>, transform_indices = @transform_4, window_bounds = array<i64: 4, 384, 64>}, {pipeline_mode = #tpu.pipeline_mode<synchronous>, transform_indices = @transform_5, window_bounds = array<i64: 4, 1, 64>}, {transform_indices = @transform_6, window_bounds = array<i64: 1, 8, 64>}]} {
    %cst = arith.constant 0.000000e+00 : f32
    %0 = vector.broadcast %cst : f32 to vector<1x18x128xf32>
    %c0 = arith.constant 0 : index
    %c0_0 = arith.constant 0 : index
    %c0_1 = arith.constant 0 : index
    %1 = vector.load %arg8[%c0, %c0_0, %c0_1] : memref<1x18x128xf32, #tpu.memory_space<vmem>>, vector<1x18x128xf32>
    tpu.vector_store %arg8[%c0, %c0_0, %c0_1], %0 {strides = array<i32>} : memref<1x18x128xf32, #tpu.memory_space<vmem>>, vector<1x18x128xf32>,
    %c0_2 = arith.constant 0 : index
    %c0_3 = arith.constant 0 : index
    %c0_4 = arith.constant 0 : index
    %2 = vector.load %arg1[%c0_2, %c0_3, %c0_4] : memref<1x16x64xf32, #tpu.memory_space<vmem>>, vector<1x16x64xf32>
    %c0_5 = arith.constant 0 : index
    %c1 = arith.constant 1 : index
    %c0_6 = arith.constant 0 : index
    %3 = vector.load %arg8[%c0_5, %c1, %c0_6] : memref<1x18x128xf32, #tpu.memory_space<vmem>>, vector<1x16x64xf32>
    tpu.vector_store %arg8[%c0_5, %c1, %c0_6], %2 {strides = array<i32>} : memref<1x18x128xf32, #tpu.memory_space<vmem>>, vector<1x16x64xf32>,
    %c0_7 = arith.constant 0 : index
    %c0_8 = arith.constant 0 : index
    %4 = vector.load %arg2[%c0_7, %c0_8] : memref<384x128xf32, #tpu.memory_space<vmem>>, vector<384x128xf32>
    %c0_9 = arith.constant 0 : index
    %c0_10 = arith.constant 0 : index
    %5 = vector.load %arg3[%c0_9, %c0_10] : memref<1x128xf32, #tpu.memory_space<vmem>>, vector<1x128xf32>
    %c0_11 = arith.constant 0 : index
    %c0_12 = arith.constant 0 : index
    %c0_13 = arith.constant 0 : index
    %6 = vector.load %arg8[%c0_11, %c0_12, %c0_13] : memref<1x18x128xf32, #tpu.memory_space<vmem>>, vector<1x18x128xf32>
    %7 = vector.extract_strided_slice %6 {offsets = [0, 0, 0], sizes = [1, 16, 128], strides = [1, 1, 1]} : vector<1x18x128xf32> to vector<1x16x128xf32>
    %8 = vector.extract_strided_slice %6 {offsets = [0, 1, 0], sizes = [1, 16, 128], strides = [1, 1, 1]} : vector<1x18x128xf32> to vector<1x16x128xf32>
    %9 = vector.extract_strided_slice %6 {offsets = [0, 2, 0], sizes = [1, 16, 128], strides = [1, 1, 1]} : vector<1x18x128xf32> to vector<1x16x128xf32>
    %10 = tpu.concatenate %7, %8, %9 in 2 : vector<1x16x128xf32>, vector<1x16x128xf32>, vector<1x16x128xf32> -> vector<1x16x384xf32>
    %11 = vector.shape_cast %10 : vector<1x16x384xf32> to vector<16x384xf32>
    %cst_14 = arith.constant dense<0.000000e+00> : vector<16x128xf32>
    %12 = tpu.matmul %11, %4, %cst_14 {dimension_numbers = #tpu.dot_dimension_numbers<[1], [0], [0], [1], [0, 0, 1, 1], [], []>} : vector<16x384xf32>, vector<384x128xf32>, vector<16x128xf32> -> vector<16x128xf32>
    %13 = vector.broadcast %5 : vector<1x128xf32> to vector<16x128xf32>
    %14 = arith.addf %12, %13 : vector<16x128xf32>
    %cst_15 = arith.constant -1.000000e+30 : f32
    %15 = vector.broadcast %cst_15 : f32 to vector<16x8xf32>
    %16 = vector.extract_strided_slice %14 {offsets = [0, 0], sizes = [16, 120], strides = [1, 1]} : vector<16x128xf32> to vector<16x120xf32>
    %17 = tpu.concatenate %15, %16 in 1 : vector<16x8xf32>, vector<16x120xf32> -> vector<16x128xf32>
    %18 = vector.extract_strided_slice %14 {offsets = [0, 8], sizes = [16, 120], strides = [1, 1]} : vector<16x128xf32> to vector<16x120xf32>
    %19 = tpu.concatenate %18, %15 in 1 : vector<16x120xf32>, vector<16x8xf32> -> vector<16x128xf32>
    %20 = arith.maximumf %14, %17 : vector<16x128xf32>
    %21 = arith.maximumf %20, %19 : vector<16x128xf32>
    %c0_16 = arith.constant 0 : index
    %c0_17 = arith.constant 0 : index
    %22 = vector.load %arg4[%c0_16, %c0_17] : memref<128x64xf32, #tpu.memory_space<vmem>>, vector<128x64xf32>
    %cst_18 = arith.constant dense<0.000000e+00> : vector<16x64xf32>
    %23 = tpu.matmul %21, %22, %cst_18 {dimension_numbers = #tpu.dot_dimension_numbers<[1], [0], [0], [1], [0, 0, 1, 1], [], []>} : vector<16x128xf32>, vector<128x64xf32>, vector<16x64xf32> -> vector<16x64xf32>
    %24 = vector.shape_cast %23 : vector<16x64xf32> to vector<1x8x2x64xf32>
    %25 = vector.extract_strided_slice %24 {offsets = [0, 0, 0, 0], sizes = [1, 8, 1, 64], strides = [1, 1, 1, 1]} : vector<1x8x2x64xf32> to vector<1x8x1x64xf32>
    %26 = vector.shape_cast %25 : vector<1x8x1x64xf32> to vector<1x8x64xf32>
    %27 = vector.extract_strided_slice %24 {offsets = [0, 0, 1, 0], sizes = [1, 8, 1, 64], strides = [1, 1, 1, 1]} : vector<1x8x2x64xf32> to vector<1x8x1x64xf32>
    %28 = vector.shape_cast %27 : vector<1x8x1x64xf32> to vector<1x8x64xf32>
    %cst_19 = arith.constant -1.000000e+30 : f32
    %29 = vector.broadcast %cst_19 : f32 to vector<1x1x64xf32>
    %30 = vector.extract_strided_slice %28 {offsets = [0, 0, 0], sizes = [1, 7, 64], strides = [1, 1, 1]} : vector<1x8x64xf32> to vector<1x7x64xf32>
    %31 = tpu.concatenate %29, %30 in 1 : vector<1x1x64xf32>, vector<1x7x64xf32> -> vector<1x8x64xf32>
    %32 = arith.maximumf %26, %28 : vector<1x8x64xf32>
    %33 = arith.maximumf %32, %31 : vector<1x8x64xf32>
    %cst_20 = arith.constant 0.000000e+00 : f32
    %34 = vector.broadcast %cst_20 : f32 to vector<1x10x128xf32>
    %c0_21 = arith.constant 0 : index
    %c0_22 = arith.constant 0 : index
    %c0_23 = arith.constant 0 : index
    %35 = vector.load %arg9[%c0_21, %c0_22, %c0_23] : memref<1x10x128xf32, #tpu.memory_space<vmem>>, vector<1x10x128xf32>
    tpu.vector_store %arg9[%c0_21, %c0_22, %c0_23], %34 {strides = array<i32>} : memref<1x10x128xf32, #tpu.memory_space<vmem>>, vector<1x10x128xf32>,
    %cst_24 = arith.constant 0.000000e+00 : f32
    %36 = vector.broadcast %cst_24 : f32 to vector<1x8x64xf32>
    %37 = arith.maximumf %33, %36 : vector<1x8x64xf32>
    %c0_25 = arith.constant 0 : index
    %c1_26 = arith.constant 1 : index
    %c0_27 = arith.constant 0 : index
    %38 = vector.load %arg9[%c0_25, %c1_26, %c0_27] : memref<1x10x128xf32, #tpu.memory_space<vmem>>, vector<1x8x64xf32>
    tpu.vector_store %arg9[%c0_25, %c1_26, %c0_27], %37 {strides = array<i32>} : memref<1x10x128xf32, #tpu.memory_space<vmem>>, vector<1x8x64xf32>,
    %c0_28 = arith.constant 0 : index
    %c0_29 = arith.constant 0 : index
    %c0_30 = arith.constant 0 : index
    %39 = vector.load %arg5[%c0_28, %c0_29, %c0_30] : memref<4x384x64xf32, #tpu.memory_space<vmem>>, vector<1x384x64xf32>
    %40 = vector.shape_cast %39 : vector<1x384x64xf32> to vector<384x64xf32>
    %c0_31 = arith.constant 0 : index
    %c0_32 = arith.constant 0 : index
    %c0_33 = arith.constant 0 : index
    %41 = vector.load %arg6[%c0_31, %c0_32, %c0_33] : memref<4x1x64xf32, #tpu.memory_space<vmem>>, vector<1x1x64xf32>
    %42 = vector.shape_cast %41 : vector<1x1x64xf32> to vector<1x64xf32>
    %c0_34 = arith.constant 0 : index
    %c0_35 = arith.constant 0 : index
    %c0_36 = arith.constant 0 : index
    %43 = vector.load %arg9[%c0_34, %c0_35, %c0_36] : memref<1x10x128xf32, #tpu.memory_space<vmem>>, vector<1x10x128xf32>
    %44 = vector.extract_strided_slice %43 {offsets = [0, 0, 0], sizes = [1, 8, 128], strides = [1, 1, 1]} : vector<1x10x128xf32> to vector<1x8x128xf32>
    %45 = vector.extract_strided_slice %43 {offsets = [0, 1, 0], sizes = [1, 8, 128], strides = [1, 1, 1]} : vector<1x10x128xf32> to vector<1x8x128xf32>
    %46 = vector.extract_strided_slice %43 {offsets = [0, 2, 0], sizes = [1, 8, 128], strides = [1, 1, 1]} : vector<1x10x128xf32> to vector<1x8x128xf32>
    %47 = tpu.concatenate %44, %45, %46 in 2 : vector<1x8x128xf32>, vector<1x8x128xf32>, vector<1x8x128xf32> -> vector<1x8x384xf32>
    %48 = vector.shape_cast %47 : vector<1x8x384xf32> to vector<8x384xf32>
    %cst_37 = arith.constant dense<0.000000e+00> : vector<8x64xf32>
    %49 = tpu.matmul %48, %40, %cst_37 {dimension_numbers = #tpu.dot_dimension_numbers<[1], [0], [0], [1], [0, 0, 1, 1], [], []>} : vector<8x384xf32>, vector<384x64xf32>, vector<8x64xf32> -> vector<8x64xf32>
    %50 = vector.broadcast %42 : vector<1x64xf32> to vector<8x64xf32>
    %51 = arith.addf %49, %50 : vector<8x64xf32>
    %cst_38 = arith.constant 0.000000e+00 : f32
    %52 = vector.broadcast %cst_38 : f32 to vector<8x64xf32>
    %53 = arith.maximumf %51, %52 : vector<8x64xf32>
    %54 = vector.shape_cast %53 : vector<8x64xf32> to vector<1x8x64xf32>
    %c0_39 = arith.constant 0 : index
    %c1_40 = arith.constant 1 : index
    %c0_41 = arith.constant 0 : index
    %55 = vector.load %arg9[%c0_39, %c1_40, %c0_41] : memref<1x10x128xf32, #tpu.memory_space<vmem>>, vector<1x8x64xf32>
    tpu.vector_store %arg9[%c0_39, %c1_40, %c0_41], %54 {strides = array<i32>} : memref<1x10x128xf32, #tpu.memory_space<vmem>>, vector<1x8x64xf32>,
    %c1_42 = arith.constant 1 : index
    %c0_43 = arith.constant 0 : index
    %c0_44 = arith.constant 0 : index
    %56 = vector.load %arg5[%c1_42, %c0_43, %c0_44] : memref<4x384x64xf32, #tpu.memory_space<vmem>>, vector<1x384x64xf32>
    %57 = vector.shape_cast %56 : vector<1x384x64xf32> to vector<384x64xf32>
    %c1_45 = arith.constant 1 : index
    %c0_46 = arith.constant 0 : index
    %c0_47 = arith.constant 0 : index
    %58 = vector.load %arg6[%c1_45, %c0_46, %c0_47] : memref<4x1x64xf32, #tpu.memory_space<vmem>>, vector<1x1x64xf32>
    %59 = vector.shape_cast %58 : vector<1x1x64xf32> to vector<1x64xf32>
    %c0_48 = arith.constant 0 : index
    %c0_49 = arith.constant 0 : index
    %c0_50 = arith.constant 0 : index
    %60 = vector.load %arg9[%c0_48, %c0_49, %c0_50] : memref<1x10x128xf32, #tpu.memory_space<vmem>>, vector<1x10x128xf32>
    %61 = vector.extract_strided_slice %60 {offsets = [0, 0, 0], sizes = [1, 8, 128], strides = [1, 1, 1]} : vector<1x10x128xf32> to vector<1x8x128xf32>
    %62 = vector.extract_strided_slice %60 {offsets = [0, 1, 0], sizes = [1, 8, 128], strides = [1, 1, 1]} : vector<1x10x128xf32> to vector<1x8x128xf32>
    %63 = vector.extract_strided_slice %60 {offsets = [0, 2, 0], sizes = [1, 8, 128], strides = [1, 1, 1]} : vector<1x10x128xf32> to vector<1x8x128xf32>
    %64 = tpu.concatenate %61, %62, %63 in 2 : vector<1x8x128xf32>, vector<1x8x128xf32>, vector<1x8x128xf32> -> vector<1x8x384xf32>
    %65 = vector.shape_cast %64 : vector<1x8x384xf32> to vector<8x384xf32>
    %cst_51 = arith.constant dense<0.000000e+00> : vector<8x64xf32>
    %66 = tpu.matmul %65, %57, %cst_51 {dimension_numbers = #tpu.dot_dimension_numbers<[1], [0], [0], [1], [0, 0, 1, 1], [], []>} : vector<8x384xf32>, vector<384x64xf32>, vector<8x64xf32> -> vector<8x64xf32>
    %67 = vector.broadcast %59 : vector<1x64xf32> to vector<8x64xf32>
    %68 = arith.addf %66, %67 : vector<8x64xf32>
    %69 = vector.shape_cast %68 : vector<8x64xf32> to vector<1x8x64xf32>
    %70 = arith.addf %69, %33 : vector<1x8x64xf32>
    %cst_52 = arith.constant 0.000000e+00 : f32
    %71 = vector.broadcast %cst_52 : f32 to vector<1x8x64xf32>
    %72 = arith.maximumf %70, %71 : vector<1x8x64xf32>
    %c0_53 = arith.constant 0 : index
    %c1_54 = arith.constant 1 : index
    %c0_55 = arith.constant 0 : index
    %73 = vector.load %arg9[%c0_53, %c1_54, %c0_55] : memref<1x10x128xf32, #tpu.memory_space<vmem>>, vector<1x8x64xf32>
    tpu.vector_store %arg9[%c0_53, %c1_54, %c0_55], %72 {strides = array<i32>} : memref<1x10x128xf32, #tpu.memory_space<vmem>>, vector<1x8x64xf32>,
    %c2 = arith.constant 2 : index
    %c0_56 = arith.constant 0 : index
    %c0_57 = arith.constant 0 : index
    %74 = vector.load %arg5[%c2, %c0_56, %c0_57] : memref<4x384x64xf32, #tpu.memory_space<vmem>>, vector<1x384x64xf32>
    %75 = vector.shape_cast %74 : vector<1x384x64xf32> to vector<384x64xf32>
    %c2_58 = arith.constant 2 : index
    %c0_59 = arith.constant 0 : index
    %c0_60 = arith.constant 0 : index
    %76 = vector.load %arg6[%c2_58, %c0_59, %c0_60] : memref<4x1x64xf32, #tpu.memory_space<vmem>>, vector<1x1x64xf32>
    %77 = vector.shape_cast %76 : vector<1x1x64xf32> to vector<1x64xf32>
    %c0_61 = arith.constant 0 : index
    %c0_62 = arith.constant 0 : index
    %c0_63 = arith.constant 0 : index
    %78 = vector.load %arg9[%c0_61, %c0_62, %c0_63] : memref<1x10x128xf32, #tpu.memory_space<vmem>>, vector<1x10x128xf32>
    %79 = vector.extract_strided_slice %78 {offsets = [0, 0, 0], sizes = [1, 8, 128], strides = [1, 1, 1]} : vector<1x10x128xf32> to vector<1x8x128xf32>
    %80 = vector.extract_strided_slice %78 {offsets = [0, 1, 0], sizes = [1, 8, 128], strides = [1, 1, 1]} : vector<1x10x128xf32> to vector<1x8x128xf32>
    %81 = vector.extract_strided_slice %78 {offsets = [0, 2, 0], sizes = [1, 8, 128], strides = [1, 1, 1]} : vector<1x10x128xf32> to vector<1x8x128xf32>
    %82 = tpu.concatenate %79, %80, %81 in 2 : vector<1x8x128xf32>, vector<1x8x128xf32>, vector<1x8x128xf32> -> vector<1x8x384xf32>
    %83 = vector.shape_cast %82 : vector<1x8x384xf32> to vector<8x384xf32>
    %cst_64 = arith.constant dense<0.000000e+00> : vector<8x64xf32>
    %84 = tpu.matmul %83, %75, %cst_64 {dimension_numbers = #tpu.dot_dimension_numbers<[1], [0], [0], [1], [0, 0, 1, 1], [], []>} : vector<8x384xf32>, vector<384x64xf32>, vector<8x64xf32> -> vector<8x64xf32>
    %85 = vector.broadcast %77 : vector<1x64xf32> to vector<8x64xf32>
    %86 = arith.addf %84, %85 : vector<8x64xf32>
    %cst_65 = arith.constant 0.000000e+00 : f32
    %87 = vector.broadcast %cst_65 : f32 to vector<8x64xf32>
    %88 = arith.maximumf %86, %87 : vector<8x64xf32>
    %89 = vector.shape_cast %88 : vector<8x64xf32> to vector<1x8x64xf32>
    %c0_66 = arith.constant 0 : index
    %c1_67 = arith.constant 1 : index
    %c0_68 = arith.constant 0 : index
    %90 = vector.load %arg9[%c0_66, %c1_67, %c0_68] : memref<1x10x128xf32, #tpu.memory_space<vmem>>, vector<1x8x64xf32>
    tpu.vector_store %arg9[%c0_66, %c1_67, %c0_68], %89 {strides = array<i32>} : memref<1x10x128xf32, #tpu.memory_space<vmem>>, vector<1x8x64xf32>,
    %c3 = arith.constant 3 : index
    %c0_69 = arith.constant 0 : index
    %c0_70 = arith.constant 0 : index
    %91 = vector.load %arg5[%c3, %c0_69, %c0_70] : memref<4x384x64xf32, #tpu.memory_space<vmem>>, vector<1x384x64xf32>
    %92 = vector.shape_cast %91 : vector<1x384x64xf32> to vector<384x64xf32>
    %c3_71 = arith.constant 3 : index
    %c0_72 = arith.constant 0 : index
    %c0_73 = arith.constant 0 : index
    %93 = vector.load %arg6[%c3_71, %c0_72, %c0_73] : memref<4x1x64xf32, #tpu.memory_space<vmem>>, vector<1x1x64xf32>
    %94 = vector.shape_cast %93 : vector<1x1x64xf32> to vector<1x64xf32>
    %c0_74 = arith.constant 0 : index
    %c0_75 = arith.constant 0 : index
    %c0_76 = arith.constant 0 : index
    %95 = vector.load %arg9[%c0_74, %c0_75, %c0_76] : memref<1x10x128xf32, #tpu.memory_space<vmem>>, vector<1x10x128xf32>
    %96 = vector.extract_strided_slice %95 {offsets = [0, 0, 0], sizes = [1, 8, 128], strides = [1, 1, 1]} : vector<1x10x128xf32> to vector<1x8x128xf32>
    %97 = vector.extract_strided_slice %95 {offsets = [0, 1, 0], sizes = [1, 8, 128], strides = [1, 1, 1]} : vector<1x10x128xf32> to vector<1x8x128xf32>
    %98 = vector.extract_strided_slice %95 {offsets = [0, 2, 0], sizes = [1, 8, 128], strides = [1, 1, 1]} : vector<1x10x128xf32> to vector<1x8x128xf32>
    %99 = tpu.concatenate %96, %97, %98 in 2 : vector<1x8x128xf32>, vector<1x8x128xf32>, vector<1x8x128xf32> -> vector<1x8x384xf32>
    %100 = vector.shape_cast %99 : vector<1x8x384xf32> to vector<8x384xf32>
    %cst_77 = arith.constant dense<0.000000e+00> : vector<8x64xf32>
    %101 = tpu.matmul %100, %92, %cst_77 {dimension_numbers = #tpu.dot_dimension_numbers<[1], [0], [0], [1], [0, 0, 1, 1], [], []>} : vector<8x384xf32>, vector<384x64xf32>, vector<8x64xf32> -> vector<8x64xf32>
    %102 = vector.broadcast %94 : vector<1x64xf32> to vector<8x64xf32>
    %103 = arith.addf %101, %102 : vector<8x64xf32>
    %104 = vector.shape_cast %103 : vector<8x64xf32> to vector<1x8x64xf32>
    %105 = arith.addf %104, %70 : vector<1x8x64xf32>
    %c0_78 = arith.constant 0 : index
    %c0_79 = arith.constant 0 : index
    %c0_80 = arith.constant 0 : index
    %106 = vector.load %arg7[%c0_78, %c0_79, %c0_80] : memref<1x8x64xf32, #tpu.memory_space<vmem>>, vector<1x8x64xf32>
    tpu.vector_store %arg7[%c0_78, %c0_79, %c0_80], %105 {strides = array<i32>} : memref<1x8x64xf32, #tpu.memory_space<vmem>>, vector<1x8x64xf32>,
    return
  }
  func.func @transform_0(%arg0: i32) -> (i32, i32, i32) {
    %c0_i32 = arith.constant 0 : i32
    %c0_i32_0 = arith.constant 0 : i32
    %c0_i32_1 = arith.constant 0 : i32
    return %arg0, %c0_i32, %c0_i32_0 : i32, i32, i32
  }
  func.func @transform_1(%arg0: i32) -> (i32, i32) {
    %c0_i32 = arith.constant 0 : i32
    %c0_i32_0 = arith.constant 0 : i32
    %c0_i32_1 = arith.constant 0 : i32
    return %c0_i32, %c0_i32_0 : i32, i32
  }
  func.func @transform_2(%arg0: i32) -> (i32, i32) {
    %c0_i32 = arith.constant 0 : i32
    %c0_i32_0 = arith.constant 0 : i32
    %c0_i32_1 = arith.constant 0 : i32
    return %c0_i32, %c0_i32_0 : i32, i32
  }
  func.func @transform_3(%arg0: i32) -> (i32, i32) {
    %c0_i32 = arith.constant 0 : i32
    %c0_i32_0 = arith.constant 0 : i32
    %c0_i32_1 = arith.constant 0 : i32
    return %c0_i32, %c0_i32_0 : i32, i32
  }
  func.func @transform_4(%arg0: i32) -> (i32, i32, i32) {
    %c0_i32 = arith.constant 0 : i32
    %c0_i32_0 = arith.constant 0 : i32
    %c0_i32_1 = arith.constant 0 : i32
    %c0_i32_2 = arith.constant 0 : i32
    return %c0_i32, %c0_i32_0, %c0_i32_1 : i32, i32, i32
  }
  func.func @transform_5(%arg0: i32) -> (i32, i32, i32) {
    %c0_i32 = arith.constant 0 : i32
    %c0_i32_0 = arith.constant 0 : i32
    %c0_i32_1 = arith.constant 0 : i32
    %c0_i32_2 = arith.constant 0 : i32
    return %c0_i32, %c0_i32_0, %c0_i32_1 : i32, i32, i32
  }
  func.func @transform_6(%arg0: i32) -> (i32, i32, i32) {
    %c0_i32 = arith.constant 0 : i32
    %c0_i32_0 = arith.constant 0 : i32
    %c0_i32_1 = arith.constant 0 : i32
    return %arg0, %c0_i32, %c0_i32_0 : i32, i32, i32
  }
}

</mosaic_0001>

<bundles_post_ra>
// kernel: tile.28
= control target key start
LH: loop header
LB: loop body
LE: loop exit
PB: predicated region body
PF: predicated region fallthrough
CT: control target
= control target key end

     0   :  { %s28_s0 = inlined_call_operand.vmem [shape: f32[8], index: 0, kind: input, shape index: {}]   ;;  %s29_s1 = inlined_call_operand.vmem [shape: f32[16,8], index: 1, kind: output, shape index: {}]  }
   0x1   :  { %v4_v0 = vld [vmem:[%s28_s0] ss:$0 sm:$0xff] }
   0x2   :  { %5 = vst [vmem:[%s29_s1] sm:$0xff] %v4_v0  ;;  %8 = vst [vmem:[%s29_s1 + $0x8] sm:$0xff] %v4_v0 }

// kernel: tile.29
= control target key start
LH: loop header
LB: loop body
LE: loop exit
PB: predicated region body
PF: predicated region fallthrough
CT: control target
= control target key end

     0   :  { %s133_s10 = smov 120   ;;  %s134_s11 = smov 104   ;;  %vm3_vm0 = vcmask 64512   ;;  %vm9_vm1 = vcmask 1048512   ;;  %vm15_vm2 = vcmask 982912   ;;  %vm21_vm3 = vcmask 917312   ;;  %s209_s0 = inlined_call_operand.vmem [shape: f32[16,8], index: 0, kind: input, shape index: {}]   ;;  %s210_s1 = inlined_call_operand.vmem [shape: f32[1,128], index: 1, kind: output, shape index: {}]  }
   0x1   :  { %v103_v0 = vld [vmem:[%s209_s0 + $0xf] sm:$0x1]   ;;  %v105_v1 = vld [vmem:[%s209_s0 + $0xd] sm:$0x1]   ;;  %v104_v2 = vld [vmem:[%s209_s0 + $0xe] sm:$0x1]  }
   0x2   :  { %7 = vrot.lane.b32.xlu0 %v103_v0, %s133_s10  ;;  %19 = vrot.lane.b32.xlu1 %v105_v1, %s134_s11  ;;  %v106_v3 = vld [vmem:[%s209_s0 + $0xc] sm:$0x1]   ;;  %s135_s16 = smov 112   ;;  %s136_s17 = smov 96   ;;  %v107_v4 = vld [vmem:[%s209_s0 + $0xb] sm:$0x1]  }
   0x3   :  { %v108_v5 = vld [vmem:[%s209_s0 + $0xa] sm:$0x1]   ;;  %v2_v6 = vld [vmem:[%s209_s0] sm:$0x1]   ;;  %s137_s24 = smov 88   ;;  %s138_s25 = smov 80  }
   0x4   :  { %4 = vst.msk [vmem:[#allocation0] sm:$0x1] %vm3_vm0, %v2_v6   ;;  %v109_v7 = vld [vmem:[%s209_s0 + $0x9] sm:$0x1]   ;;  %v110_v8 = vld [vmem:[%s209_s0 + $0x8] sm:$0x1]  }
   0x5   :  { %s139_s30 = smov 72   ;;  %s140_s2 = smov 64   ;;  %v111_v9 = vld [vmem:[%s209_s0 + $0x7] sm:$0x1]   ;;  %v112_v10 = vld [vmem:[%s209_s0 + $0x6] sm:$0x1]  }
   0x6   :  { %13 = vrot.lane.b32.xlu0 %v104_v2, %s135_s16  ;;  %25 = vrot.lane.b32.xlu1 %v106_v3, %s136_s17  ;;  %s141_s7 = smov 56   ;;  %s142_s8 = smov 48   ;;  %v113_v11 = vld [vmem:[%s209_s0 + $0x5] sm:$0x1]   ;;  %v114_v12 = vld [vmem:[%s209_s0 + $0x4] sm:$0x1]  }
   0x7   :  { %s143_s13 = smov 40   ;;  %s144_s14 = smov 32   ;;  %v115_v13 = vld [vmem:[%s209_s0 + $0x3] sm:$0x1]   ;;  %v116_v14 = vld [vmem:[%s209_s0 + $0x2] sm:$0x1]  }
   0x8   :  { %s145_s19 = smov 24   ;;  %s146_s20 = smov 16   ;;  %v117_v15 = vld [vmem:[%s209_s0 + $0x1] sm:$0x1]   ;;  %vm27_vm4 = vcmask 851712   ;;  %vm33_vm5 = vcmask 786112  }
   0x9   :  { %s147_s0 = smov 8   ;;  %vm39_vm6 = vcmask 720512   ;;  %vm45_vm7 = vcmask 654912   ;;  %vm51_vm8 = vcmask 589312   ;;  %vm57_vm9 = vcmask 523712  }
   0xa   :  { %31 = vrot.lane.b32.xlu0 %v107_v4, %s137_s24  ;;  %37 = vrot.lane.b32.xlu1 %v108_v5, %s138_s25  ;;  %vm63_vm10 = vcmask 458112   ;;  %vm69_vm11 = vcmask 392512   ;;  %vm75_vm12 = vcmask 326912   ;;  %vm81_vm13 = vcmask 261312  }
   0xb   :  { %vm87_vm14 = vcmask 195712   ;;  %vm93_vm15 = vcmask 130112  }
   0xe   :  { %43 = vrot.lane.b32.xlu0 %v109_v7, %s139_s30  ;;  %49 = vrot.lane.b32.xlu1 %v110_v8, %s140_s2 }
  0x12   :  { %55 = vrot.lane.b32.xlu0 %v111_v9, %s141_s7  ;;  %61 = vrot.lane.b32.xlu1 %v112_v10, %s142_s8 }
  0x16   :  { %67 = vrot.lane.b32.xlu0 %v113_v11, %s143_s13  ;;  %73 = vrot.lane.b32.xlu1 %v114_v12, %s144_s14 }
  0x1a   :  { %79 = vrot.lane.b32.xlu0 %v115_v13, %s145_s19  ;;  %85 = vrot.lane.b32.xlu1 %v116_v14, %s146_s20 }
  0x1e   :  { %91 = vrot.lane.b32.xlu0 %v117_v15, %s147_s0 }
  0x74   :  { %v8_v16 = vpop.permute.xlu0 %7   ;;  %v20_v17 = vpop.permute.xlu1 %19  }
  0x75   :  { %10 = vst.msk [vmem:[#allocation0] sm:$0x1] %vm9_vm1, %v8_v16  }
  0x78   :  { %v14_v18 = vpop.permute.xlu0 %13   ;;  %v26_v19 = vpop.permute.xlu1 %25  }
  0x79   :  { %16 = vst.msk [vmem:[#allocation0] sm:$0x1] %vm15_vm2, %v14_v18  }
  0x7a   :  { %22 = vst.msk [vmem:[#allocation0] sm:$0x1] %vm21_vm3, %v20_v17  }
  0x7b   :  { %28 = vst.msk [vmem:[#allocation0] sm:$0x1] %vm27_vm4, %v26_v19  }
  0x7c   :  { %v32_v20 = vpop.permute.xlu0 %31   ;;  %v38_v21 = vpop.permute.xlu1 %37  }
  0x7d   :  { %34 = vst.msk [vmem:[#allocation0] sm:$0x1] %vm33_vm5, %v32_v20  }
  0x7e   :  { %40 = vst.msk [vmem:[#allocation0] sm:$0x1] %vm39_vm6, %v38_v21  }
  0x80   :  { %v44_v22 = vpop.permute.xlu0 %43   ;;  %v50_v23 = vpop.permute.xlu1 %49  }
  0x81   :  { %46 = vst.msk [vmem:[#allocation0] sm:$0x1] %vm45_vm7, %v44_v22  }
  0x82   :  { %52 = vst.msk [vmem:[#allocation0] sm:$0x1] %vm51_vm8, %v50_v23  }
  0x84   :  { %v56_v24 = vpop.permute.xlu0 %55   ;;  %v62_v25 = vpop.permute.xlu1 %61  }
  0x85   :  { %58 = vst.msk [vmem:[#allocation0] sm:$0x1] %vm57_vm9, %v56_v24  }
  0x86   :  { %64 = vst.msk [vmem:[#allocation0] sm:$0x1] %vm63_vm10, %v62_v25  }
  0x88   :  { %v68_v26 = vpop.permute.xlu0 %67   ;;  %v74_v27 = vpop.permute.xlu1 %73  }
  0x89   :  { %70 = vst.msk [vmem:[#allocation0] sm:$0x1] %vm69_vm11, %v68_v26  }
  0x8a   :  { %76 = vst.msk [vmem:[#allocation0] sm:$0x1] %vm75_vm12, %v74_v27  }
  0x8c   :  { %v80_v28 = vpop.permute.xlu0 %79   ;;  %v86_v29 = vpop.permute.xlu1 %85  }
  0x8d   :  { %82 = vst.msk [vmem:[#allocation0] sm:$0x1] %vm81_vm13, %v80_v28  }
  0x8e   :  { %88 = vst.msk [vmem:[#allocation0] sm:$0x1] %vm87_vm14, %v86_v29  }
  0x90   :  { %v92_v30 = vpop.permute.xlu0 %91  }
  0x91   :  { %94 = vst.msk [vmem:[#allocation0] sm:$0x1] %vm93_vm15, %v92_v30  }
  0x98   :  { %v99_v31 = vld [vmem:[#allocation0] sm:$0x1] }
  0x99   :  { %102 = vst [vmem:[%s210_s1] sm:$0x1] %v99_v31 }

// kernel: tile.45
= control target key start
LH: loop header
LB: loop body
LE: loop exit
PB: predicated region body
PF: predicated region fallthrough
CT: control target
= control target key end

     0   :  { %s22_s0 = inlined_call_operand.vmem [shape: f32[8], index: 0, kind: input, shape index: {}]   ;;  %s23_s1 = inlined_call_operand.vmem [shape: f32[8,8], index: 1, kind: output, shape index: {}]  }
   0x1   :  { %v4_v0 = vld [vmem:[%s22_s0] ss:$0 sm:$0xff] }
   0x2   :  { %5 = vst [vmem:[%s23_s1] sm:$0xff] %v4_v0 }

// kernel: tile.49
= control target key start
LH: loop header
LB: loop body
LE: loop exit
PB: predicated region body
PF: predicated region fallthrough
CT: control target
= control target key end

     0   :  { %s69_s10 = smov 56   ;;  %s70_s11 = smov 40   ;;  %vm3_vm0 = vcmask 64512   ;;  %vm9_vm1 = vcmask 523712   ;;  %vm15_vm2 = vcmask 458112   ;;  %vm21_vm3 = vcmask 392512   ;;  %s113_s0 = inlined_call_operand.vmem [shape: f32[8,8], index: 0, kind: input, shape index: {}]   ;;  %s114_s1 = inlined_call_operand.vmem [shape: f32[1,1,64], index: 1, kind: output, shape index: {}]  }
   0x1   :  { %v55_v0 = vld [vmem:[%s113_s0 + $0x7] sm:$0x1]   ;;  %v57_v1 = vld [vmem:[%s113_s0 + $0x5] sm:$0x1]   ;;  %v56_v2 = vld [vmem:[%s113_s0 + $0x6] sm:$0x1]  }
   0x2   :  { %7 = vrot.lane.b32.xlu0 %v55_v0, %s69_s10  ;;  %19 = vrot.lane.b32.xlu1 %v57_v1, %s70_s11  ;;  %v58_v3 = vld [vmem:[%s113_s0 + $0x4] sm:$0x1]   ;;  %v2_v4 = vld [vmem:[%s113_s0] sm:$0x1]   ;;  %s71_s18 = smov 48   ;;  %s72_s19 = smov 32  }
   0x3   :  { %4 = vst.msk [vmem:[#allocation0] sm:$0x1] %vm3_vm0, %v2_v4   ;;  %v59_v5 = vld [vmem:[%s113_s0 + $0x3] sm:$0x1]   ;;  %v60_v6 = vld [vmem:[%s113_s0 + $0x2] sm:$0x1]  }
   0x4   :  { %s73_s24 = smov 24   ;;  %s74_s25 = smov 16   ;;  %v61_v7 = vld [vmem:[%s113_s0 + $0x1] sm:$0x1]   ;;  %vm27_vm4 = vcmask 326912   ;;  %vm33_vm5 = vcmask 261312  }
   0x5   :  { %s75_s0 = smov 8   ;;  %vm39_vm6 = vcmask 195712   ;;  %vm45_vm7 = vcmask 130112  }
   0x6   :  { %13 = vrot.lane.b32.xlu0 %v56_v2, %s71_s18  ;;  %25 = vrot.lane.b32.xlu1 %v58_v3, %s72_s19 }
   0xa   :  { %31 = vrot.lane.b32.xlu0 %v59_v5, %s73_s24  ;;  %37 = vrot.lane.b32.xlu1 %v60_v6, %s74_s25 }
   0xe   :  { %43 = vrot.lane.b32.xlu0 %v61_v7, %s75_s0 }
  0x74   :  { %v8_v8 = vpop.permute.xlu0 %7   ;;  %v20_v9 = vpop.permute.xlu1 %19  }
  0x75   :  { %10 = vst.msk [vmem:[#allocation0] sm:$0x1] %vm9_vm1, %v8_v8  }
  0x78   :  { %v14_v10 = vpop.permute.xlu0 %13   ;;  %v26_v11 = vpop.permute.xlu1 %25  }
  0x79   :  { %16 = vst.msk [vmem:[#allocation0] sm:$0x1] %vm15_vm2, %v14_v10  }
  0x7a   :  { %22 = vst.msk [vmem:[#allocation0] sm:$0x1] %vm21_vm3, %v20_v9  }
  0x7b   :  { %28 = vst.msk [vmem:[#allocation0] sm:$0x1] %vm27_vm4, %v26_v11  }
  0x7c   :  { %v32_v12 = vpop.permute.xlu0 %31   ;;  %v38_v13 = vpop.permute.xlu1 %37  }
  0x7d   :  { %34 = vst.msk [vmem:[#allocation0] sm:$0x1] %vm33_vm5, %v32_v12  }
  0x7e   :  { %40 = vst.msk [vmem:[#allocation0] sm:$0x1] %vm39_vm6, %v38_v13  }
  0x80   :  { %v44_v14 = vpop.permute.xlu0 %43  }
  0x81   :  { %46 = vst.msk [vmem:[#allocation0] sm:$0x1] %vm45_vm7, %v44_v14  }
  0x88   :  { %v51_v15 = vld [vmem:[#allocation0] sm:$0x1] }
  0x89   :  { %54 = vst [vmem:[%s114_s1] sm:$0x1] %v51_v15 }

// kernel: conv_sequence_forward.1
= control target key start
LH: loop header
LB: loop body
LE: loop exit
PB: predicated region body
PF: predicated region fallthrough
CT: control target
= control target key end

     0   :  { %s2495_s21 = smov 0   ;;  %s3430_s0 = inlined_call_operand.vmem [shape: f32[2,16,64], index: 0, kind: input, shape index: {}]   ;;  %s3431_s1 = inlined_call_operand.vmem [shape: f32[384,128], index: 1, kind: input, shape index: {}]   ;;  %s3432_s2 = inlined_call_operand.vmem [shape: f32[1,128], index: 2, kind: input, shape index: {}]   ;;  %s3433_s3 = inlined_call_operand.vmem [shape: f32[128,64], index: 3, kind: input, shape index: {}]   ;;  %s3434_s4 = inlined_call_operand.vmem [shape: f32[4,384,64], index: 4, kind: input, shape index: {}]   ;;  %s3435_s5 = inlined_call_operand.vmem [shape: f32[4,1,64], index: 5, kind: input, shape index: {}]   ;;  %s3436_s6 = inlined_call_operand.vmem [shape: f32[2,8,64], index: 6, kind: output, shape index: {}]  }
   0x1 LB: > { %s1761_s22 = sadd.s32 4294967295, %s2453_s21   ;;  %p1765_p0 = scmp.ge.s32.totalorder %s2453_s21, 1  ;;  %s2453_s21 = sphi %s2495_s21, %s16_s21  }
   0x2   : > { %p212_p1 = scmp.lt.s32.totalorder %s2453_s21, 3 }
   0x4   : > { %p213_p2 = pnand %p1765_p0, %p212_p1 }
   0x5   : > { %p2520_p3 = scmp.lt.s32.totalorder (!%p213_p2), %s1761_s22, 1  ;;  %s2456_s26 = smov (!%p213_p2), 8  }
   0x6   : > { %216 = sbr.rel (%p213_p2) target bundleno = 1465 (0x5b9), region = 44 }
   0xb   : > { %v289_v0 = vld [vmem:[%s3431_s1 + $0xf8] sm:$0xff]  ;;  %v288_v2 = vld [vmem:[%s3431_s1 + $0xf0] sm:$0xff]  ;;  %v2455_v5 = vmov 0.0   ;;  %v287_v6 = vld [vmem:[%s3431_s1 + $0xe8] sm:$0xff]  ;;  %s3439_s22 = smov (!%p2520_p3, %s1761_s22), 1  ;;  %vm255_vm0 = vcmask 523264  }
   0xc   : > { %v273_v1 = vld [vmem:[%s3431_s1 + $0x78] sm:$0xff]  ;;  %1932 = vmatprep.subr.mxu0 %v289_v0  ;;  %v272_v3 = vld [vmem:[%s3431_s1 + $0x70] sm:$0xff]  ;;  %250 = vst [vmem:[#allocation2] sm:$0xff] %v2455_v5  ;;  %251 = vst [vmem:[#allocation2 + $0x8] sm:$0xff] %v2455_v5  ;;  %s1931_s14 = sshll.u32 %s3439_s22, 4  ;;  %vm313_vm1 = vcmask 1046528  }
   0xd   : > { %v305_v4 = vld [vmem:[%s3431_s1 + $0x178] sm:$0xff]  ;;  %252 = vst [vmem:[#allocation2 + $0x10] sm:$0x3] %v2455_v5  ;;  %757 = vst [vmem:[#allocation3] sm:$0xff] %v2455_v5  ;;  %1933 = vmatpush3.msra.mxu0 %v273_v1  ;;  %v304_v7 = vld [vmem:[%s3431_s1 + $0x170] sm:$0xff]  ;;  %s245_s27 = scalar_lea.vmem %s3430_s0, %s1931_s14  ;;  %vm321_vm2 = vcmask 1045504  }
   0xe   : > { %758 = vst [vmem:[#allocation3 + $0x8] sm:$0x3] %v2455_v5  ;;  %2214 = vmatprep.subr.mxu1 %v305_v4  ;;  %1934 = vmatprep.subr.mxu0 %v288_v2  ;;  %v271_v8 = vld [vmem:[%s3431_s1 + $0x68] sm:$0xff]  ;;  %v286_v10 = vld [vmem:[%s3431_s1 + $0xe0] sm:$0xff]  ;;  %v285_v13 = vld [vmem:[%s3431_s1 + $0xd8] sm:$0xff]  ;;  %vm493_vm3 = vcmask 64512  }
   0xf   : > { %2215 = vmatpush3.msra.mxu1 %v305_v4  ;;  %v303_v9 = vld [vmem:[%s3431_s1 + $0x168] sm:$0xff]  ;;  %1935 = vmatpush3.msra.mxu0 %v272_v3  ;;  %v270_v11 = vld [vmem:[%s3431_s1 + $0x60] sm:$0xff]  ;;  %v269_v14 = vld [vmem:[%s3431_s1 + $0x58] sm:$0xff]  ;;  %vm502_vm4 = vcmask 982016   ;;  %vm2458_vm5 = vmmov 0   ;;  %vm672_vm6 = vcmask 1042434  }
  0x10   : > { %2216 = vmatprep.subr.mxu1 %v304_v7  ;;  %1936 = vmatprep.subr.mxu0 %v287_v6  ;;  %v302_v12 = vld [vmem:[%s3431_s1 + $0x160] sm:$0xff]  ;;  %v301_v15 = vld [vmem:[%s3431_s1 + $0x158] sm:$0xff]  ;;  %v284_v16 = vld [vmem:[%s3431_s1 + $0xd0] sm:$0xff]  ;;  %vm674_vm7 = vcmask 1043459   ;;  %vm676_vm8 = vcmask 1044484   ;;  %vm678_vm9 = vcmask 1045509  }
  0x11   : > { %2217 = vmatpush3.msra.mxu1 %v304_v7  ;;  %1937 = vmatpush3.msra.mxu0 %v271_v8  ;;  %v268_v17 = vld [vmem:[%s3431_s1 + $0x50] sm:$0xff]  ;;  %v283_v19 = vld [vmem:[%s3431_s1 + $0xc8] sm:$0xff]  ;;  %v282_v22 = vld [vmem:[%s3431_s1 + $0xc0] sm:$0xff]  ;;  %vm680_vm10 = vcmask 1046534   ;;  %vm682_vm11 = vcmask 1047559   ;;  %vm685_vm12 = vcmask 1040384  }
  0x12   : > { %2218 = vmatprep.subr.mxu1 %v303_v9  ;;  %1938 = vmatprep.subr.mxu0 %v286_v10  ;;  %v300_v18 = vld [vmem:[%s3431_s1 + $0x150] sm:$0xff]  ;;  %v267_v20 = vld [vmem:[%s3431_s1 + $0x48] sm:$0xff]  ;;  %v266_v23 = vld [vmem:[%s3431_s1 + $0x40] sm:$0xff]  ;;  %vm807_vm13 = vcmask 1041409   ;;  %s1768_s24 = sshll.u32 %s3439_s22, 3 }
  0x13   : > { %2219 = vmatpush3.msra.mxu1 %v303_v9  ;;  %1939 = vmatpush3.msra.mxu0 %v270_v11  ;;  %v299_v21 = vld [vmem:[%s3431_s1 + $0x148] sm:$0xff]  ;;  %v298_v24 = vld [vmem:[%s3431_s1 + $0x140] sm:$0xff]  ;;  %v281_v25 = vld [vmem:[%s3431_s1 + $0xb8] sm:$0xff] }
  0x14   : > { %2220 = vmatprep.subr.mxu1 %v302_v12  ;;  %1940 = vmatprep.subr.mxu0 %v285_v13  ;;  %v265_v26 = vld [vmem:[%s3431_s1 + $0x38] sm:$0xff]  ;;  %v253_v28 = vld [vmem:[%s245_s27] sm:$0xff]  ;;  %v254_v29 = vld [vmem:[%s245_s27 + $0x8] sm:$0xff]  ;;  %s2457_s27 = smov 120  }
  0x15   : > { %2221 = vmatpush3.msra.mxu1 %v302_v12  ;;  %1941 = vmatpush3.msra.mxu0 %v269_v14  ;;  %v297_v27 = vld [vmem:[%s3431_s1 + $0x138] sm:$0xff]  ;;  %v280_v30 = vld [vmem:[%s3431_s1 + $0xb0] sm:$0xff]  ;;  %256 = vst.msk [vmem:[#allocation2 + $0x1] sm:$0xff] %vm255_vm0, %v253_v28  ;;  %257 = vst.msk [vmem:[#allocation2 + $0x9] sm:$0xff] %vm255_vm0, %v254_v29 }
  0x16   : > { %2222 = vmatprep.subr.mxu1 %v301_v15  ;;  %1942 = vmatprep.subr.mxu0 %v284_v16  ;;  %v264_v31 = vld [vmem:[%s3431_s1 + $0x30] sm:$0xff]  ;;  %v279_v33 = vld [vmem:[%s3431_s1 + $0xa8] sm:$0xff]  ;;  %v278_v36 = vld [vmem:[%s3431_s1 + $0xa0] sm:$0xff] }
  0x17   : > { %2223 = vmatpush3.msra.mxu1 %v301_v15  ;;  %1943 = vmatpush3.msra.mxu0 %v268_v17  ;;  %v296_v32 = vld [vmem:[%s3431_s1 + $0x130] sm:$0xff]  ;;  %v263_v34 = vld [vmem:[%s3431_s1 + $0x28] sm:$0xff]  ;;  %v262_v37 = vld [vmem:[%s3431_s1 + $0x20] sm:$0xff] }
  0x18   : > { %2224 = vmatprep.subr.mxu1 %v300_v18  ;;  %1944 = vmatprep.subr.mxu0 %v283_v19  ;;  %v295_v35 = vld [vmem:[%s3431_s1 + $0x128] sm:$0xff]  ;;  %v294_v38 = vld [vmem:[%s3431_s1 + $0x120] sm:$0xff]  ;;  %v277_v39 = vld [vmem:[%s3431_s1 + $0x98] sm:$0xff] }
  0x19   : > { %2225 = vmatpush3.msra.mxu1 %v300_v18  ;;  %1945 = vmatpush3.msra.mxu0 %v267_v20  ;;  %v261_v40 = vld [vmem:[%s3431_s1 + $0x18] sm:$0xff]  ;;  %v276_v44 = vld [vmem:[%s3431_s1 + $0x90] sm:$0xff]  ;;  %v275_v50 = vld [vmem:[%s3431_s1 + $0x88] sm:$0xff] }
  0x1a   : > { %2226 = vmatprep.subr.mxu1 %v299_v21  ;;  %1946 = vmatprep.subr.mxu0 %v282_v22  ;;  %v293_v41 = vld [vmem:[%s3431_s1 + $0x118] sm:$0xff]  ;;  %v260_v48 = vld [vmem:[%s3431_s1 + $0x10] sm:$0xff]  ;;  %v259_v52 = vld [vmem:[%s3431_s1 + $0x8] sm:$0xff] }
  0x1b   : > { %2227 = vmatpush3.msra.mxu1 %v299_v21  ;;  %1947 = vmatpush3.msra.mxu0 %v266_v23  ;;  %v292_v49 = vld [vmem:[%s3431_s1 + $0x110] sm:$0xff]  ;;  %v274_v54 = vld [vmem:[%s3431_s1 + $0x80] sm:$0xff]  ;;  %v291_v55 = vld [vmem:[%s3431_s1 + $0x108] sm:$0xff] }
  0x1c   : > { %2228 = vmatprep.subr.mxu1 %v298_v24  ;;  %1948 = vmatprep.subr.mxu0 %v281_v25  ;;  %v307_v42 = vld [vmem:[#allocation2] sm:$0xff]  ;;  %v308_v43 = vld [vmem:[#allocation2 + $0x8] sm:$0xff]  ;;  %v309_v47 = vld [vmem:[#allocation2 + $0x10] sm:$0x3] }
  0x1d   : > { %2229 = vmatpush3.msra.mxu1 %v298_v24  ;;  %1949 = vmatpush3.msra.mxu0 %v265_v26  ;;  %v314_v45 = vrot.slane %v307_v42, 1  ;;  %v315_v46 = vrot.slane %v308_v43, 1  ;;  %v317_v53 = vrot.slane %v309_v47, 1  ;;  %v322_v56 = vrot.slane %v307_v42, 2  ;;  %v258_v58 = vld [vmem:[%s3431_s1] sm:$0xff]  ;;  %v524_v0 = vld [vmem:[%s3433_s3 + $0x78] sm:$0xff] }
  0x1e   : > { %2230 = vmatprep.subr.mxu1 %v297_v27  ;;  %1950 = vmatprep.subr.mxu0 %v280_v30  ;;  %v323_v57 = vrot.slane %v308_v43, 2  ;;  %v325_v59 = vrot.slane %v309_v47, 2  ;;  %v290_v60 = vld [vmem:[%s3431_s1 + $0x100] sm:$0xff]  ;;  %v523_v1 = vld [vmem:[%s3433_s3 + $0x70] sm:$0xff]  ;;  %v522_v2 = vld [vmem:[%s3433_s3 + $0x68] sm:$0xff] }
  0x1f   : > { %2231 = vmatpush3.msra.mxu1 %v297_v27  ;;  %1951 = vmatpush3.msra.mxu0 %v264_v31  ;;  %v316_v51 = vsel %vm313_vm1, %v314_v45, %v315_v46  ;;  %v318_v61 = vsel %vm313_vm1, %v315_v46, %v317_v53  ;;  %v521_v3 = vld [vmem:[%s3433_s3 + $0x60] sm:$0xff]  ;;  %v520_v4 = vld [vmem:[%s3433_s3 + $0x58] sm:$0xff]  ;;  %v519_v6 = vld [vmem:[%s3433_s3 + $0x50] sm:$0xff] }
  0x20   : > { %2232 = vmatprep.subr.mxu1 %v296_v32  ;;  %1952 = vmatprep.subr.mxu0 %v279_v33  ;;  %v324_v62 = vsel %vm321_vm2, %v322_v56, %v323_v57  ;;  %v326_v63 = vsel %vm321_vm2, %v323_v57, %v325_v59  ;;  %v518_v7 = vld [vmem:[%s3433_s3 + $0x48] sm:$0xff]  ;;  %v517_v8 = vld [vmem:[%s3433_s3 + $0x40] sm:$0xff]  ;;  %v516_v9 = vld [vmem:[%s3433_s3 + $0x38] sm:$0xff] }
  0x21   : > { %2233 = vmatpush3.msra.mxu1 %v296_v32  ;;  %1953 = vmatpush3.msra.mxu0 %v263_v34  ;;  %v515_v10 = vld [vmem:[%s3433_s3 + $0x30] sm:$0xff]  ;;  %v514_v11 = vld [vmem:[%s3433_s3 + $0x28] sm:$0xff]  ;;  %v513_v13 = vld [vmem:[%s3433_s3 + $0x20] sm:$0xff] }
  0x22   : > { %2234 = vmatprep.subr.mxu1 %v295_v35  ;;  %1954 = vmatprep.subr.mxu0 %v278_v36  ;;  %v512_v16 = vld [vmem:[%s3433_s3 + $0x18] sm:$0xff]  ;;  %v1769_v19 = vld [vmem:[%s3432_s2] ss:$0 sm:$0xff]  ;;  %v511_v20 = vld [vmem:[%s3433_s3 + $0x10] sm:$0xff] }
  0x23   : > { %2235 = vmatpush3.msra.mxu1 %v295_v35  ;;  %1955 = vmatpush3.msra.mxu0 %v262_v37  ;;  %v510_v24 = vld [vmem:[%s3433_s3 + $0x8] sm:$0xff]  ;;  %v509_v27 = vld [vmem:[%s3433_s3] sm:$0xff]  ;;  %v848_v45 = vld [vmem:[%s3434_s4 + $0xf8] sm:$0xff] }
  0x24   : > { %2236 = vmatprep.subr.mxu1 %v294_v38  ;;  %1956 = vmatprep.subr.mxu0 %v277_v39  ;;  %v864_v46 = vld [vmem:[%s3434_s4 + $0x178] sm:$0xff]  ;;  %v830_v53 = vld [vmem:[%s3434_s4 + $0x68] sm:$0xff]  ;;  %v829_v56 = vld [vmem:[%s3434_s4 + $0x60] sm:$0xff] }
  0x25   : > { %2237 = vmatpush3.msra.mxu1 %v294_v38  ;;  %1957 = vmatpush3.msra.mxu0 %v261_v40  ;;  %v832_v47 = vld [vmem:[%s3434_s4 + $0x78] sm:$0xff] }
  0x26   : > { %2238 = vmatprep.subr.mxu1 %v293_v41  ;;  %1958 = vmatprep.subr.mxu0 %v276_v44  ;;  %v844_v57 = vld [vmem:[%s3434_s4 + $0xd8] sm:$0xff] }
  0x27   : > { %2239 = vmatpush3.msra.mxu1 %v293_v41  ;;  %1959 = vmatpush3.msra.mxu0 %v260_v48  ;;  %v847_v48 = vld [vmem:[%s3434_s4 + $0xf0] sm:$0xff]  ;;  %v828_v59 = vld [vmem:[%s3434_s4 + $0x58] sm:$0xff] }
  0x28   : > { %2240 = vmatprep.subr.mxu1 %v292_v49  ;;  %1960 = vmatprep.subr.mxu0 %v275_v50  ;;  %v831_v50 = vld [vmem:[%s3434_s4 + $0x70] sm:$0xff] }
  0x29   : > { %399 = vmatprep.mubr.f32.mxu0 %v316_v51  ;;  %1961 = vmatpush3.msra.mxu0 %v259_v52  ;;  %v846_v51 = vld [vmem:[%s3434_s4 + $0xe8] sm:$0xff] }
  0x2a   : > { %2241 = vmatpush3.msra.mxu1 %v292_v49  ;;  %1962 = vmatprep.subr.mxu0 %v274_v54  ;;  %v863_v49 = vld [vmem:[%s3434_s4 + $0x170] sm:$0xff]  ;;  %v862_v52 = vld [vmem:[%s3434_s4 + $0x168] sm:$0xff]  ;;  %v845_v54 = vld [vmem:[%s3434_s4 + $0xe0] sm:$0xff] }
  0x2b   : > { %2242 = vmatprep.subr.mxu1 %v291_v55  ;;  %1963 = vmatpush3.msra.mxu0 %v258_v58  ;;  %v860_v58 = vld [vmem:[%s3434_s4 + $0x158] sm:$0xff] }
  0x2c   : > { %2243 = vmatpush3.msra.mxu1 %v291_v55  ;;  %400 = vmatmul.mubr.f32.vlgmr.msra.gmra.mxu0 %v307_v42  ;;  %v861_v55 = vld [vmem:[%s3434_s4 + $0x160] sm:$0xff] }
  0x2d   : > { %2244 = vmatprep.subr.mxu1 %v290_v60  ;;  %404 = vmatprep.mubr.f32.mxu0 %v318_v61  ;;  %v859_v61 = vld [vmem:[%s3434_s4 + $0x150] sm:$0xff] }
  0x2e   : > { %2245 = vmatpush3.msra.mxu1 %v290_v60  ;;  %2246 = vmatprep.mubr.f32.mxu1 %v324_v62  ;;  %v843_v60 = vld [vmem:[%s3434_s4 + $0xd0] sm:$0xff] }
  0x2f   : > { %2247 = vmatmul.mubr.f32.vlgmr.msra.gmra.mxu1 %v326_v63  ;;  %2249 = vmatprep.subr.mxu0 %v524_v0  ;;  %v827_v62 = vld [vmem:[%s3434_s4 + $0x50] sm:$0xff]  ;;  %v842_v63 = vld [vmem:[%s3434_s4 + $0xc8] sm:$0xff] }
  0x30   : > { %405 = vmatmul.mubr.f32.gmra.mxu0 %v308_v43  ;;  %2006 = vmatprep.subr.mxu1 %v848_v45 }
  0x31   : > { %2250 = vmatpush3.msra.mxu0 %v524_v0  ;;  %2007 = vmatpush3.msra.mxu1 %v832_v47  ;;  %v858_v0 = vld [vmem:[%s3434_s4 + $0x148] sm:$0xff] }
  0x32   : > { %2251 = vmatprep.subr.mxu0 %v523_v1  ;;  %2008 = vmatprep.subr.mxu1 %v847_v48 }
  0x33   : > { %2252 = vmatpush3.msra.mxu0 %v523_v1  ;;  %2009 = vmatpush3.msra.mxu1 %v831_v50  ;;  %v826_v1 = vld [vmem:[%s3434_s4 + $0x48] sm:$0xff] }
  0x34   : > { %2253 = vmatprep.subr.mxu0 %v522_v2  ;;  %2010 = vmatprep.subr.mxu1 %v846_v51 }
  0x35   : > { %2254 = vmatpush3.msra.mxu0 %v522_v2  ;;  %2011 = vmatpush3.msra.mxu1 %v830_v53  ;;  %v841_v2 = vld [vmem:[%s3434_s4 + $0xc0] sm:$0xff] }
  0x36   : > { %2255 = vmatprep.subr.mxu0 %v521_v3  ;;  %2012 = vmatprep.subr.mxu1 %v845_v54 }
  0x37   : > { %2256 = vmatpush3.msra.mxu0 %v521_v3  ;;  %2013 = vmatpush3.msra.mxu1 %v829_v56  ;;  %v857_v3 = vld [vmem:[%s3434_s4 + $0x140] sm:$0xff] }
  0x38   : > { %2257 = vmatprep.subr.mxu0 %v520_v4  ;;  %2014 = vmatprep.subr.mxu1 %v844_v57 }
  0x39   : > { %2258 = vmatpush3.msra.mxu0 %v520_v4  ;;  %2015 = vmatpush3.msra.mxu1 %v828_v59  ;;  %v825_v4 = vld [vmem:[%s3434_s4 + $0x40] sm:$0xff] }
  0x3a   : > { %2259 = vmatprep.subr.mxu0 %v519_v6  ;;  %2016 = vmatprep.subr.mxu1 %v843_v60 }
  0x3b   : > { %2260 = vmatpush3.msra.mxu0 %v519_v6  ;;  %2017 = vmatpush3.msra.mxu1 %v827_v62  ;;  %v840_v6 = vld [vmem:[%s3434_s4 + $0xb8] sm:$0xff] }
  0x3c   : > { %2261 = vmatprep.subr.mxu0 %v518_v7  ;;  %2018 = vmatprep.subr.mxu1 %v842_v63 }
  0x3d   : > { %2262 = vmatpush3.msra.mxu0 %v518_v7  ;;  %2019 = vmatpush3.msra.mxu1 %v826_v1  ;;  %v856_v7 = vld [vmem:[%s3434_s4 + $0x138] sm:$0xff] }
  0x3e   : > { %2263 = vmatprep.subr.mxu0 %v517_v8  ;;  %2020 = vmatprep.subr.mxu1 %v841_v2 }
  0x3f   : > { %2264 = vmatpush3.msra.mxu0 %v517_v8  ;;  %2021 = vmatpush3.msra.mxu1 %v825_v4  ;;  %v824_v8 = vld [vmem:[%s3434_s4 + $0x38] sm:$0xff] }
  0x40   : > { %2265 = vmatprep.subr.mxu0 %v516_v9  ;;  %2022 = vmatprep.subr.mxu1 %v840_v6 }
  0x41   : > { %2266 = vmatpush3.msra.mxu0 %v516_v9  ;;  %v839_v9 = vld [vmem:[%s3434_s4 + $0xb0] sm:$0xff]  ;;  %2023 = vmatpush3.msra.mxu1 %v824_v8 }
  0x42   : > { %2267 = vmatprep.subr.mxu0 %v515_v10  ;;  %2024 = vmatprep.subr.mxu1 %v839_v9 }
  0x43   : > { %2268 = vmatpush3.msra.mxu0 %v515_v10  ;;  %v855_v10 = vld [vmem:[%s3434_s4 + $0x130] sm:$0xff] }
  0x44   : > { %2269 = vmatprep.subr.mxu0 %v514_v11 }
  0x45   : > { %2270 = vmatpush3.msra.mxu0 %v514_v11  ;;  %v823_v11 = vld [vmem:[%s3434_s4 + $0x30] sm:$0xff] }
  0x46   : > { %2271 = vmatprep.subr.mxu0 %v513_v13  ;;  %2025 = vmatpush3.msra.mxu1 %v823_v11 }
  0x47   : > { %2272 = vmatpush3.msra.mxu0 %v513_v13  ;;  %v854_v13 = vld [vmem:[%s3434_s4 + $0x128] sm:$0xff] }
  0x48   : > { %2273 = vmatprep.subr.mxu0 %v512_v16 }
  0x49   : > { %2274 = vmatpush3.msra.mxu0 %v512_v16  ;;  %v853_v16 = vld [vmem:[%s3434_s4 + $0x120] sm:$0xff] }
  0x4a   : > { %2275 = vmatprep.subr.mxu0 %v511_v20 }
  0x4b   : > { %2276 = vmatpush3.msra.mxu0 %v511_v20  ;;  %v820_v20 = vld [vmem:[%s3434_s4 + $0x18] sm:$0xff] }
  0x4c   : > { %2277 = vmatprep.subr.mxu0 %v510_v24 }
  0x4d   : > { %2278 = vmatpush3.msra.mxu0 %v510_v24  ;;  %v834_v24 = vld [vmem:[%s3434_s4 + $0x88] sm:$0xff] }
  0x4e   : > { %2279 = vmatprep.subr.mxu0 %v509_v27 }
  0x4f   : > { %2280 = vmatpush3.msra.mxu0 %v509_v27  ;;  %v833_v27 = vld [vmem:[%s3434_s4 + $0x80] sm:$0xff] }
  0x50   : > { %2284 = vmatprep.subr.mxu0 %v2455_v5 }
  0xec   : > { %v1964_v12 = vpop.f32.mrf.mxu0 }
  0xee   : > { %v1965_v14 = vpop.f32.mrf.mxu0 }
  0xef   : > { %v1966_v15 = vadd.f32 %v1965_v14, %v1964_v12  ;;  %v2248_v18 = vpop.f32.mrf.mxu1  ;;  %v838_v12 = vld [vmem:[%s3434_s4 + $0xa8] sm:$0xff] }
  0xf0   : > { %v1967_v17 = vpop.f32.mrf.mxu0  ;;  %v822_v14 = vld [vmem:[%s3434_s4 + $0x28] sm:$0xff]  ;;  %2026 = vmatprep.subr.mxu1 %v838_v12 }
  0xf1   : > { %v402_v23 = vadd.f32 %v1966_v15, %v1769_v19  ;;  %v476_v25 = vpop.f32.mrf.mxu1  ;;  %v837_v15 = vld [vmem:[%s3434_s4 + $0xa0] sm:$0xff]  ;;  %2027 = vmatpush3.msra.mxu1 %v822_v14 }
  0xf2   : > { %v1968_v21 = vpop.f32.mrf.mxu0  ;;  %2028 = vmatprep.subr.mxu1 %v837_v15 }
  0xf3   : > { %v1969_v22 = vadd.f32 %v1968_v21, %v1967_v17  ;;  %v477_v29 = vadd.f32 %v476_v25, %v402_v23  ;;  %v821_v17 = vld [vmem:[%s3434_s4 + $0x20] sm:$0xff]  ;;  %v835_v21 = vld [vmem:[%s3434_s4 + $0x90] sm:$0xff]  ;;  %v850_v25 = vld [vmem:[%s3434_s4 + $0x108] sm:$0xff] }
  0xf4   : > { %2029 = vmatpush3.msra.mxu1 %v821_v17  ;;  %v819_v23 = vld [vmem:[%s3434_s4 + $0x10] sm:$0xff] }
  0xf5   : > { %v407_v26 = vadd.f32 %v1969_v22, %v1769_v19  ;;  %v852_v19 = vld [vmem:[%s3434_s4 + $0x118] sm:$0xff]  ;;  %v851_v22 = vld [vmem:[%s3434_s4 + $0x110] sm:$0xff] }
  0xf7   : > { %v482_v28 = vadd.f32 %v2248_v18, %v407_v26  ;;  %v836_v18 = vld [vmem:[%s3434_s4 + $0x98] sm:$0xff]  ;;  %v818_v26 = vld [vmem:[%s3434_s4 + $0x8] sm:$0xff] }
  0xf8   : > { %2030 = vmatprep.subr.mxu1 %v836_v18 }
  0xf9   : > { %v2437_v30 = vpack.i.bf16 %v482_v28, %v477_v29  ;;  %2031 = vmatpush3.msra.mxu1 %v820_v20 }
  0xfa   : > { %2032 = vmatprep.subr.mxu1 %v835_v21 }
  0xfb   : > { %2438 = vrot.lane.b32.xlu0 %v2437_v30, %s2456_s26  ;;  %2033 = vmatpush3.msra.mxu1 %v819_v23 }
  0xfc   : > { %2034 = vmatprep.subr.mxu1 %v834_v24 }
  0xfd   : > { %2035 = vmatpush3.msra.mxu1 %v818_v26 }
  0xfe   : > { %2036 = vmatprep.subr.mxu1 %v833_v27 }
  0xff   : > { %2443 = vrot.lane.b32.xlu0 %v2437_v30, %s2457_s27  ;;  %v1810_v30 = vld [vmem:[%s3434_s4 + $0x278] sm:$0xff]  ;;  %s249_s27 = scalar_lea.vmem %s3436_s6, %s1768_s24 }
 0x16d   : > { %v2439_v31 = vpop.permute.xlu0 %2438 }
 0x16e   : > { %v2441_v32 = vunpack.i.h.bf16 %v2439_v31  ;;  %v2440_v33 = vunpack.i.l.bf16 %v2439_v31  ;;  %v2459_v31 = vmov 1983009808  }
 0x170   : > { %v495_v34 = vsel %vm493_vm3, -1e+30, %v2441_v32  ;;  %v494_v35 = vsel %vm493_vm3, -1e+30, %v2440_v33  ;;  %v604_v32 = vunpack.c.l.s4 %v2459_v31  ;;  %v606_v33 = vlaneseq }
 0x171   : > { %v2444_v36 = vpop.permute.xlu0 %2443  ;;  %v506_v39 = vmax.f32 %v482_v28, %v495_v34  ;;  %v505_v40 = vmax.f32 %v477_v29, %v494_v35  ;;  %v849_v28 = vld [vmem:[%s3434_s4 + $0x100] sm:$0xff] }
 0x172   : > { %v2446_v37 = vunpack.i.h.bf16 %v2444_v36  ;;  %v2445_v38 = vunpack.i.l.bf16 %v2444_v36  ;;  %v817_v29 = vld [vmem:[%s3434_s4] sm:$0xff]  ;;  %v605_v34 = vunpack.c.0.s8 %v604_v32  ;;  %v607_v35 = vshrl.u32 %v606_v33, 7 }
 0x173   : > { %2037 = vmatpush3.msra.mxu1 %v817_v29 }
 0x174   : > { %v504_v41 = vsel %vm502_vm4, %v2446_v37, -1e+30  ;;  %v503_v42 = vsel %vm502_vm4, %v2445_v38, -1e+30  ;;  %2058 = vmatprep.subr.mxu1 %v1810_v30  ;;  %v608_v36 = vsub.s32 %v605_v34, %v607_v35  ;;  %v777_v14 = vsub.s32 0, %v607_v35 }
 0x175   : > { %v507_v43 = vmax.f32 %v505_v40, %v503_v42  ;;  %v508_v44 = vmax.f32 %v506_v39, %v504_v41 }
 0x177   : > { %2281 = vmatprep.mubr.f32.mxu0 %v507_v43  ;;  %v646_v43 = vsub.s32 1, %v607_v35 }
 0x178   : > { %2282 = vmatmul.mubr.f32.vlgmr.msra.gmra.mxu0 %v508_v44 }
 0x179   : > { %2285 = vmatpush3.msra.mxu0 %v864_v46  ;;  %2316 = vmatprep.mubr.msk.f32.mxu0 %vm2458_vm5, %v2455_v5 }
 0x17a   : > { %2286 = vmatprep.subr.mxu0 %v2455_v5 }
 0x17b   : > { %2287 = vmatpush3.msra.mxu0 %v863_v49 }
 0x17c   : > { %2288 = vmatprep.subr.mxu0 %v2455_v5 }
 0x17d   : > { %2289 = vmatpush3.msra.mxu0 %v862_v52 }
 0x17e   : > { %2290 = vmatprep.subr.mxu0 %v2455_v5 }
 0x17f   : > { %2291 = vmatpush3.msra.mxu0 %v861_v55 }
 0x180   : > { %2292 = vmatprep.subr.mxu0 %v2455_v5 }
 0x181   : > { %2293 = vmatpush3.msra.mxu0 %v860_v58 }
 0x182   : > { %2294 = vmatprep.subr.mxu0 %v2455_v5 }
 0x183   : > { %2295 = vmatpush3.msra.mxu0 %v859_v61 }
 0x184   : > { %2296 = vmatprep.subr.mxu0 %v2455_v5 }
 0x185   : > { %2297 = vmatpush3.msra.mxu0 %v858_v0 }
 0x186   : > { %2298 = vmatprep.subr.mxu0 %v2455_v5 }
 0x187   : > { %2299 = vmatpush3.msra.mxu0 %v857_v3 }
 0x188   : > { %2300 = vmatprep.subr.mxu0 %v2455_v5 }
 0x189   : > { %2301 = vmatpush3.msra.mxu0 %v856_v7 }
 0x18a   : > { %2302 = vmatprep.subr.mxu0 %v2455_v5 }
 0x18b   : > { %2303 = vmatpush3.msra.mxu0 %v855_v10 }
 0x18c   : > { %2304 = vmatprep.subr.mxu0 %v2455_v5 }
 0x18d   : > { %2305 = vmatpush3.msra.mxu0 %v854_v13 }
 0x18e   : > { %2306 = vmatprep.subr.mxu0 %v2455_v5 }
 0x18f   : > { %2307 = vmatpush3.msra.mxu0 %v853_v16 }
 0x190   : > { %2308 = vmatprep.subr.mxu0 %v2455_v5 }
 0x191   : > { %2309 = vmatpush3.msra.mxu0 %v852_v19 }
 0x192   : > { %2310 = vmatprep.subr.mxu0 %v2455_v5 }
 0x193   : > { %2311 = vmatpush3.msra.mxu0 %v851_v22 }
 0x194   : > { %2312 = vmatprep.subr.mxu0 %v2455_v5 }
 0x195   : > { %2313 = vmatpush3.msra.mxu0 %v850_v25 }
 0x196   : > { %2314 = vmatprep.subr.mxu0 %v2455_v5 }
 0x197   : > { %2315 = vmatpush3.msra.mxu0 %v849_v28 }
 0x198   : > { %2319 = vmatprep.subr.mxu0 %v2455_v5 }
 0x238   : > { %v2283_v37 = vpop.f32.mrf.mxu0 }
 0x239   : > { %v619_v39 = vcombine.high %v2283_v37, %v2283_v37  ;;  %v626_v40 = vrot.slane %v2283_v37, %v608_v36 }
 0x23a   : > { %v591_v38 = vpop.f32.mrf.mxu0 }
 0x23b   : > { %v602_v41 = vcombine.high %v591_v38, %v591_v38  ;;  %v609_v42 = vrot.slane %v591_v38, %v608_v36  ;;  %v633_v46 = vrot.slane %v619_v39, %v608_v36  ;;  %v634_v47 = vcombine.high %v626_v40, %v626_v40 }
 0x23c   : > { %v663_v54 = vrot.slane %v626_v40, %v646_v43  ;;  %v1774_v62 = vrot.slane %v626_v40, 9 }
 0x23d   : > { %v616_v44 = vrot.slane %v602_v41, %v608_v36  ;;  %v617_v45 = vcombine.high %v609_v42, %v609_v42  ;;  %v647_v49 = vrot.slane %v609_v42, %v646_v43  ;;  %v635_v56 = vcombine.high %v633_v46, %v633_v46 }
 0x23e   : > { %v667_v57 = vrot.slane %v634_v47, %v646_v43  ;;  %v671_v59 = vrot.slane %v633_v46, %v646_v43  ;;  %v1770_v61 = vrot.slane %v609_v42, 9  ;;  %v1775_v63 = vrot.slane %v634_v47, 9 }
 0x23f   : > { %v618_v48 = vcombine.high %v616_v44, %v616_v44  ;;  %v651_v50 = vrot.slane %v617_v45, %v646_v43  ;;  %v655_v51 = vrot.slane %v616_v44, %v646_v43  ;;  %v1771_v1 = vrot.slane %v617_v45, 9 }
 0x240   : > { %v1776_v2 = vrot.slane %v633_v46, 9  ;;  %v1777_v4 = vrot.slane %v635_v56, 9  ;;  %v1772_v7 = vrot.slane %v616_v44, 9  ;;  %v711_v9 = vmax.f32 %v609_v42, %v1770_v61 }
 0x241   : > { %v659_v52 = vrot.slane %v618_v48, %v646_v43  ;;  %v673_v53 = vsel %vm672_vm6, %v651_v50, %v647_v49  ;;  %v1773_v8 = vrot.slane %v618_v48, 9  ;;  %v715_v12 = vmax.f32 %v626_v40, %v1774_v62 }
 0x242   : > { %v675_v55 = vsel %vm674_vm7, %v655_v51, %v673_v53  ;;  %v716_v13 = vmax.f32 %v634_v47, %v1775_v63  ;;  %v712_v15 = vmax.f32 %v617_v45, %v1771_v1  ;;  %v717_v20 = vmax.f32 %v633_v46, %v1776_v2 }
 0x243   : > { %v677_v58 = vsel %vm676_vm8, %v659_v52, %v675_v55  ;;  %v718_v21 = vmax.f32 %v635_v56, %v1777_v4  ;;  %v713_v22 = vmax.f32 %v616_v44, %v1772_v7  ;;  %v714_v23 = vmax.f32 %v618_v48, %v1773_v8 }
 0x244   : > { %v679_v60 = vsel %vm678_vm9, %v663_v54, %v677_v58 }
 0x245   : > { %v681_v0 = vsel %vm680_vm10, %v667_v57, %v679_v60 }
 0x246   : > { %v683_v3 = vsel %vm682_vm11, %v671_v59, %v681_v0 }
 0x247   : > { %v686_v6 = vsel %vm685_vm12, -1e+30, %v683_v3 }
 0x248   : > { %v720_v10 = vcombine.high %v686_v6, %v686_v6  ;;  %v727_v11 = vrot.slane %v686_v6, %v608_v36 }
 0x24a   : > { %v734_v16 = vrot.slane %v720_v10, %v608_v36  ;;  %v735_v17 = vcombine.high %v727_v11, %v727_v11  ;;  %v737_v18 = vrot.slane %v727_v11, 1  ;;  %v749_v19 = vmax.f32 %v711_v9, %v727_v11 }
 0x24c   : > { %v736_v24 = vcombine.high %v734_v16, %v734_v16  ;;  %v738_v25 = vrot.slane %v735_v17, 1  ;;  %v739_v26 = vrot.slane %v734_v16, 1  ;;  %v750_v27 = vmax.f32 %v712_v15, %v737_v18 }
 0x24d   : > { %v751_v28 = vmax.f32 %v713_v22, %v735_v17  ;;  %v753_v29 = vmax.f32 %v715_v12, %v734_v16  ;;  %v759_v30 = vmax.f32 %v749_v19, 0.0  ;;  %v1246_v31 = vrot.slane %v749_v19, %v777_v14  ;;  %v1826_v16 = vld [vmem:[%s3434_s4 + $0x2f8] sm:$0xff]  ;;  %v1793_v22 = vld [vmem:[%s3434_s4 + $0x1f0] sm:$0xff] }
 0x24e   : > { %v740_v32 = vrot.slane %v736_v24, 1  ;;  %v752_v33 = vmax.f32 %v714_v23, %v738_v25  ;;  %v754_v34 = vmax.f32 %v716_v13, %v739_v26  ;;  %v755_v35 = vmax.f32 %v717_v20, %v736_v24  ;;  %v1794_v19 = vld [vmem:[%s3434_s4 + $0x1f8] sm:$0xff]  ;;  %v1809_v20 = vld [vmem:[%s3434_s4 + $0x270] sm:$0xff]  ;;  %v1808_v23 = vld [vmem:[%s3434_s4 + $0x268] sm:$0xff] }
 0x24f   : > { %v760_v36 = vmax.f32 %v750_v27, 0.0  ;;  %v761_v37 = vmax.f32 %v751_v28, 0.0  ;;  %v763_v38 = vmax.f32 %v753_v29, 0.0  ;;  %v778_v42 = vrot.slane %v759_v30, %v777_v14  ;;  %v1824_v24 = vld [vmem:[%s3434_s4 + $0x2e8] sm:$0xff]  ;;  %v1807_v26 = vld [vmem:[%s3434_s4 + $0x260] sm:$0xff]  ;;  %v1822_v30 = vld [vmem:[%s3434_s4 + $0x2d8] sm:$0xff] }
 0x250   : > { %v756_v39 = vmax.f32 %v718_v21, %v740_v32  ;;  %v762_v40 = vmax.f32 %v752_v33, 0.0  ;;  %v764_v41 = vmax.f32 %v754_v34, 0.0  ;;  %v1250_v45 = vrot.slane %v750_v27, %v777_v14  ;;  %v1825_v21 = vld [vmem:[%s3434_s4 + $0x2f0] sm:$0xff]  ;;  %v1792_v25 = vld [vmem:[%s3434_s4 + $0x1e8] sm:$0xff]  ;;  %v1823_v27 = vld [vmem:[%s3434_s4 + $0x2e0] sm:$0xff] }
 0x251   : > { %v782_v43 = vrot.slane %v760_v36, %v777_v14  ;;  %v786_v44 = vrot.slane %v761_v37, %v777_v14  ;;  %v765_v46 = vmax.f32 %v755_v35, 0.0  ;;  %v794_v49 = vrot.slane %v763_v38, %v777_v14  ;;  %v1805_v32 = vld [vmem:[%s3434_s4 + $0x250] sm:$0xff]  ;;  %v1820_v36 = vld [vmem:[%s3434_s4 + $0x2c8] sm:$0xff]  ;;  %v1803_v38 = vld [vmem:[%s3434_s4 + $0x240] sm:$0xff] }
 0x252   : > { %v766_v47 = vmax.f32 %v756_v39, 0.0  ;;  %v790_v48 = vrot.slane %v762_v40, %v777_v14  ;;  %v1254_v51 = vrot.slane %v751_v28, %v777_v14  ;;  %v1258_v52 = vrot.slane %v752_v33, %v777_v14  ;;  %v1791_v28 = vld [vmem:[%s3434_s4 + $0x1e0] sm:$0xff]  ;;  %v1821_v33 = vld [vmem:[%s3434_s4 + $0x2d0] sm:$0xff]  ;;  %v1788_v37 = vld [vmem:[%s3434_s4 + $0x1c8] sm:$0xff] }
 0x253   : > { %v808_v50 = vsel %vm807_vm13, %v782_v43, %v778_v42  ;;  %v1275_v53 = vsel %vm807_vm13, %v1250_v45, %v1246_v31  ;;  %v798_v54 = vrot.slane %v764_v41, %v777_v14  ;;  %v1262_v56 = vrot.slane %v753_v29, %v777_v14  ;;  %v1806_v29 = vld [vmem:[%s3434_s4 + $0x258] sm:$0xff]  ;;  %v1787_v40 = vld [vmem:[%s3434_s4 + $0x1c0] sm:$0xff]  ;;  %v1817_v45 = vld [vmem:[%s3434_s4 + $0x2b0] sm:$0xff] }
 0x254   : > { %v809_v55 = vsel %vm672_vm6, %v786_v44, %v808_v50  ;;  %v1266_v57 = vrot.slane %v754_v34, %v777_v14  ;;  %v1270_v59 = vrot.slane %v755_v35, %v777_v14  ;;  %v1274_v60 = vrot.slane %v756_v39, %v777_v14  ;;  %v1790_v31 = vld [vmem:[%s3434_s4 + $0x1d8] sm:$0xff]  ;;  %v1789_v34 = vld [vmem:[%s3434_s4 + $0x1d0] sm:$0xff]  ;;  %v1804_v35 = vld [vmem:[%s3434_s4 + $0x248] sm:$0xff] }
 0x255   : > { %v810_v58 = vsel %vm674_vm7, %v790_v48, %v809_v55  ;;  %v1276_v61 = vsel %vm672_vm6, %v1254_v51, %v1275_v53  ;;  %v802_v62 = vrot.slane %v765_v46, %v777_v14  ;;  %v806_v1 = vrot.slane %v766_v47, %v777_v14  ;;  %v1819_v39 = vld [vmem:[%s3434_s4 + $0x2c0] sm:$0xff]  ;;  %v1802_v41 = vld [vmem:[%s3434_s4 + $0x238] sm:$0xff]  ;;  %v1801_v44 = vld [vmem:[%s3434_s4 + $0x230] sm:$0xff] }
 0x256   : > { %v811_v63 = vsel %vm676_vm8, %v794_v49, %v810_v58  ;;  %v1277_v0 = vsel %vm674_vm7, %v1258_v52, %v1276_v61  ;;  %v1818_v42 = vld [vmem:[%s3434_s4 + $0x2b8] sm:$0xff]  ;;  %v1785_v46 = vld [vmem:[%s3434_s4 + $0x1b0] sm:$0xff]  ;;  %v1800_v47 = vld [vmem:[%s3434_s4 + $0x228] sm:$0xff] }
 0x257   : > { %v812_v2 = vsel %vm678_vm9, %v798_v54, %v811_v63  ;;  %v1278_v3 = vsel %vm676_vm8, %v1262_v56, %v1277_v0  ;;  %v1786_v43 = vld [vmem:[%s3434_s4 + $0x1b8] sm:$0xff]  ;;  %v1816_v48 = vld [vmem:[%s3434_s4 + $0x2a8] sm:$0xff]  ;;  %v1799_v50 = vld [vmem:[%s3434_s4 + $0x220] sm:$0xff] }
 0x258   : > { %v813_v4 = vsel %vm680_vm10, %v802_v62, %v812_v2  ;;  %v1279_v6 = vsel %vm678_vm9, %v1266_v57, %v1278_v3  ;;  %v1784_v49 = vld [vmem:[%s3434_s4 + $0x1a8] sm:$0xff]  ;;  %v1815_v51 = vld [vmem:[%s3434_s4 + $0x2a0] sm:$0xff]  ;;  %v1798_v53 = vld [vmem:[%s3434_s4 + $0x218] sm:$0xff] }
 0x259   : > { %v814_v7 = vsel %vm682_vm11, %v806_v1, %v813_v4  ;;  %v1280_v8 = vsel %vm680_vm10, %v1270_v59, %v1279_v6  ;;  %v1783_v52 = vld [vmem:[%s3434_s4 + $0x1a0] sm:$0xff]  ;;  %v1814_v54 = vld [vmem:[%s3434_s4 + $0x298] sm:$0xff]  ;;  %v1797_v56 = vld [vmem:[%s3434_s4 + $0x210] sm:$0xff] }
 0x25a   : > { %816 = vst.msk [vmem:[#allocation3 + $0x1] sm:$0xff] %vm255_vm0, %v814_v7  ;;  %v2910_v9 = vsel %vm682_vm11, %v1274_v60, %v1280_v8  ;;  %v1782_v55 = vld [vmem:[%s3434_s4 + $0x198] sm:$0xff]  ;;  %v1813_v57 = vld [vmem:[%s3434_s4 + $0x290] sm:$0xff]  ;;  %v1796_v59 = vld [vmem:[%s3434_s4 + $0x208] sm:$0xff] }
 0x25b   : > { %v1781_v58 = vld [vmem:[%s3434_s4 + $0x190] sm:$0xff]  ;;  %v1812_v60 = vld [vmem:[%s3434_s4 + $0x288] sm:$0xff]  ;;  %v1795_v62 = vld [vmem:[%s3434_s4 + $0x200] sm:$0xff] }
 0x25c   : > { %v1780_v61 = vld [vmem:[%s3434_s4 + $0x188] sm:$0xff]  ;;  %v1811_v63 = vld [vmem:[%s3434_s4 + $0x280] sm:$0xff]  ;;  %v1860_v1 = vld [vmem:[%s3434_s4 + $0x3f8] sm:$0xff] }
 0x25d   : > { %v1779_v0 = vld [vmem:[%s3434_s4 + $0x180] sm:$0xff] }
 0x25e   : > { %v1778_v6 = vld [vmem:[%s3435_s5] ss:$0 sm:$0xff] }
 0x261   : > { %v866_v10 = vld [vmem:[#allocation3] sm:$0xff]  ;;  %v867_v11 = vld [vmem:[#allocation3 + $0x8] sm:$0x3] }
 0x262   : > { %v870_v12 = vrot.slane %v866_v10, 1  ;;  %v871_v13 = vrot.slane %v867_v11, 1  ;;  %v874_v14 = vrot.slane %v866_v10, 2  ;;  %v875_v15 = vrot.slane %v867_v11, 2 }
 0x264   : > { %v872_v17 = vsel %vm313_vm1, %v870_v12, %v871_v13  ;;  %v876_v18 = vsel %vm321_vm2, %v874_v14, %v875_v15 }
 0x265   : > { %948 = vmatprep.mubr.f32.mxu1 %v872_v17  ;;  %2317 = vmatmul.mubr.f32.vlgmr.msra.gmra.mxu0 %v876_v18 }
 0x266   : > { %949 = vmatmul.mubr.f32.vlgmr.msra.gmra.mxu1 %v866_v10  ;;  %2320 = vmatpush3.msra.mxu0 %v1826_v16 }
 0x267   : > { %2059 = vmatpush3.msra.mxu1 %v1794_v19  ;;  %2321 = vmatprep.subr.mxu0 %v2455_v5  ;;  %v1876_v19 = vld [vmem:[%s3434_s4 + $0x478] sm:$0xff] }
 0x268   : > { %2060 = vmatprep.subr.mxu1 %v1809_v20  ;;  %2322 = vmatpush3.msra.mxu0 %v1825_v21 }
 0x269   : > { %2061 = vmatpush3.msra.mxu1 %v1793_v22  ;;  %2323 = vmatprep.subr.mxu0 %v2455_v5  ;;  %v1844_v22 = vld [vmem:[%s3434_s4 + $0x378] sm:$0xff] }
 0x26a   : > { %2062 = vmatprep.subr.mxu1 %v1808_v23  ;;  %2324 = vmatpush3.msra.mxu0 %v1824_v24  ;;  %v1859_v23 = vld [vmem:[%s3434_s4 + $0x3f0] sm:$0xff] }
 0x26b   : > { %2063 = vmatpush3.msra.mxu1 %v1792_v25  ;;  %2325 = vmatprep.subr.mxu0 %v2455_v5  ;;  %v1875_v24 = vld [vmem:[%s3434_s4 + $0x470] sm:$0xff] }
 0x26c   : > { %2064 = vmatprep.subr.mxu1 %v1807_v26  ;;  %2326 = vmatpush3.msra.mxu0 %v1823_v27  ;;  %v1843_v25 = vld [vmem:[%s3434_s4 + $0x370] sm:$0xff]  ;;  %v1858_v26 = vld [vmem:[%s3434_s4 + $0x3e8] sm:$0xff] }
 0x26d   : > { %2065 = vmatpush3.msra.mxu1 %v1791_v28  ;;  %2327 = vmatprep.subr.mxu0 %v2455_v5  ;;  %v1874_v27 = vld [vmem:[%s3434_s4 + $0x468] sm:$0xff] }
 0x26e   : > { %2351 = vmatprep.mubr.msk.f32.mxu0 %vm2458_vm5, %v2455_v5  ;;  %2066 = vmatprep.subr.mxu1 %v1806_v29  ;;  %v1842_v28 = vld [vmem:[%s3434_s4 + $0x368] sm:$0xff]  ;;  %v1857_v29 = vld [vmem:[%s3434_s4 + $0x3e0] sm:$0xff] }
 0x26f   : > { %2328 = vmatpush3.msra.mxu0 %v1822_v30  ;;  %2067 = vmatpush3.msra.mxu1 %v1790_v31  ;;  %v1873_v30 = vld [vmem:[%s3434_s4 + $0x460] sm:$0xff] }
 0x270   : > { %2329 = vmatprep.subr.mxu0 %v2455_v5  ;;  %2068 = vmatprep.subr.mxu1 %v1805_v32  ;;  %v1841_v31 = vld [vmem:[%s3434_s4 + $0x360] sm:$0xff]  ;;  %v1856_v32 = vld [vmem:[%s3434_s4 + $0x3d8] sm:$0xff] }
 0x271   : > { %2330 = vmatpush3.msra.mxu0 %v1821_v33  ;;  %2069 = vmatpush3.msra.mxu1 %v1789_v34  ;;  %v1872_v33 = vld [vmem:[%s3434_s4 + $0x458] sm:$0xff] }
 0x272   : > { %2331 = vmatprep.subr.mxu0 %v2455_v5  ;;  %2070 = vmatprep.subr.mxu1 %v1804_v35  ;;  %v1840_v34 = vld [vmem:[%s3434_s4 + $0x358] sm:$0xff]  ;;  %v1855_v35 = vld [vmem:[%s3434_s4 + $0x3d0] sm:$0xff] }
 0x273   : > { %2332 = vmatpush3.msra.mxu0 %v1820_v36  ;;  %2071 = vmatpush3.msra.mxu1 %v1788_v37  ;;  %v1871_v36 = vld [vmem:[%s3434_s4 + $0x450] sm:$0xff] }
 0x274   : > { %2333 = vmatprep.subr.mxu0 %v2455_v5  ;;  %2072 = vmatprep.subr.mxu1 %v1803_v38  ;;  %v1839_v37 = vld [vmem:[%s3434_s4 + $0x350] sm:$0xff]  ;;  %v1854_v38 = vld [vmem:[%s3434_s4 + $0x3c8] sm:$0xff] }
 0x275   : > { %2334 = vmatpush3.msra.mxu0 %v1819_v39  ;;  %2073 = vmatpush3.msra.mxu1 %v1787_v40  ;;  %v1870_v39 = vld [vmem:[%s3434_s4 + $0x448] sm:$0xff] }
 0x276   : > { %2335 = vmatprep.subr.mxu0 %v2455_v5  ;;  %2074 = vmatprep.subr.mxu1 %v1802_v41  ;;  %v1838_v40 = vld [vmem:[%s3434_s4 + $0x348] sm:$0xff]  ;;  %v1853_v41 = vld [vmem:[%s3434_s4 + $0x3c0] sm:$0xff] }
 0x277   : > { %2336 = vmatpush3.msra.mxu0 %v1818_v42  ;;  %2075 = vmatpush3.msra.mxu1 %v1786_v43  ;;  %v1869_v42 = vld [vmem:[%s3434_s4 + $0x440] sm:$0xff] }
 0x278   : > { %2337 = vmatprep.subr.mxu0 %v2455_v5  ;;  %2076 = vmatprep.subr.mxu1 %v1801_v44  ;;  %v1837_v43 = vld [vmem:[%s3434_s4 + $0x340] sm:$0xff]  ;;  %v1852_v44 = vld [vmem:[%s3434_s4 + $0x3b8] sm:$0xff] }
 0x279   : > { %2338 = vmatpush3.msra.mxu0 %v1817_v45  ;;  %2077 = vmatpush3.msra.mxu1 %v1785_v46  ;;  %v1868_v45 = vld [vmem:[%s3434_s4 + $0x438] sm:$0xff] }
 0x27a   : > { %2339 = vmatprep.subr.mxu0 %v2455_v5  ;;  %2078 = vmatprep.subr.mxu1 %v1800_v47  ;;  %v1836_v46 = vld [vmem:[%s3434_s4 + $0x338] sm:$0xff]  ;;  %v1851_v47 = vld [vmem:[%s3434_s4 + $0x3b0] sm:$0xff] }
 0x27b   : > { %2340 = vmatpush3.msra.mxu0 %v1816_v48  ;;  %2079 = vmatpush3.msra.mxu1 %v1784_v49  ;;  %v1867_v48 = vld [vmem:[%s3434_s4 + $0x430] sm:$0xff] }
 0x27c   : > { %2341 = vmatprep.subr.mxu0 %v2455_v5  ;;  %2080 = vmatprep.subr.mxu1 %v1799_v50  ;;  %v1835_v49 = vld [vmem:[%s3434_s4 + $0x330] sm:$0xff]  ;;  %v1850_v50 = vld [vmem:[%s3434_s4 + $0x3a8] sm:$0xff] }
 0x27d   : > { %2342 = vmatpush3.msra.mxu0 %v1815_v51  ;;  %2081 = vmatpush3.msra.mxu1 %v1783_v52  ;;  %v1866_v51 = vld [vmem:[%s3434_s4 + $0x428] sm:$0xff] }
 0x27e   : > { %2343 = vmatprep.subr.mxu0 %v2455_v5  ;;  %2082 = vmatprep.subr.mxu1 %v1798_v53  ;;  %v1834_v52 = vld [vmem:[%s3434_s4 + $0x328] sm:$0xff]  ;;  %v1849_v53 = vld [vmem:[%s3434_s4 + $0x3a0] sm:$0xff] }
 0x27f   : > { %2344 = vmatpush3.msra.mxu0 %v1814_v54  ;;  %2083 = vmatpush3.msra.mxu1 %v1782_v55  ;;  %v1865_v54 = vld [vmem:[%s3434_s4 + $0x420] sm:$0xff] }
 0x280   : > { %2345 = vmatprep.subr.mxu0 %v2455_v5  ;;  %2084 = vmatprep.subr.mxu1 %v1797_v56  ;;  %v1833_v55 = vld [vmem:[%s3434_s4 + $0x320] sm:$0xff]  ;;  %v1848_v56 = vld [vmem:[%s3434_s4 + $0x398] sm:$0xff] }
 0x281   : > { %2346 = vmatpush3.msra.mxu0 %v1813_v57  ;;  %2085 = vmatpush3.msra.mxu1 %v1781_v58  ;;  %v1864_v57 = vld [vmem:[%s3434_s4 + $0x418] sm:$0xff] }
 0x282   : > { %2347 = vmatprep.subr.mxu0 %v2455_v5  ;;  %2086 = vmatprep.subr.mxu1 %v1796_v59  ;;  %v1832_v58 = vld [vmem:[%s3434_s4 + $0x318] sm:$0xff]  ;;  %v1847_v59 = vld [vmem:[%s3434_s4 + $0x390] sm:$0xff] }
 0x283   : > { %2348 = vmatpush3.msra.mxu0 %v1812_v60  ;;  %2087 = vmatpush3.msra.mxu1 %v1780_v61  ;;  %v1863_v60 = vld [vmem:[%s3434_s4 + $0x410] sm:$0xff] }
 0x284   : > { %2349 = vmatprep.subr.mxu0 %v2455_v5  ;;  %2088 = vmatprep.subr.mxu1 %v1795_v62  ;;  %v1831_v61 = vld [vmem:[%s3434_s4 + $0x310] sm:$0xff]  ;;  %v1846_v62 = vld [vmem:[%s3434_s4 + $0x388] sm:$0xff] }
 0x285   : > { %2350 = vmatpush3.msra.mxu0 %v1811_v63  ;;  %2089 = vmatpush3.msra.mxu1 %v1779_v0  ;;  %v1862_v63 = vld [vmem:[%s3434_s4 + $0x408] sm:$0xff] }
 0x286   : > { %2354 = vmatprep.subr.mxu0 %v2455_v5  ;;  %2110 = vmatprep.subr.mxu1 %v1860_v1  ;;  %v1830_v0 = vld [vmem:[%s3434_s4 + $0x308] sm:$0xff]  ;;  %v1845_v1 = vld [vmem:[%s3434_s4 + $0x380] sm:$0xff] }
 0x325   : > { %v1020_v2 = vpop.f32.mrf.mxu0 }
 0x326   : > { %v2038_v3 = vpop.f32.mrf.mxu1 }
 0x327   : > { %v2318_v4 = vpop.f32.mrf.mxu0 }
 0x328   : > { %v2039_v7 = vpop.f32.mrf.mxu1  ;;  %v1910_v4 = vld [vmem:[%s3434_s4 + $0x578] sm:$0xff] }
 0x329   : > { %v2040_v8 = vadd.f32 %v2039_v7, %v2038_v3  ;;  %v1829_v3 = vld [vmem:[%s3434_s4 + $0x300] sm:$0xff] }
 0x32b   : > { %v951_v10 = vadd.f32 %v2040_v8, %v1778_v6 }
 0x32d   : > { %v1021_v11 = vadd.f32 %v1020_v2, %v951_v10  ;;  %v1861_v2 = vld [vmem:[%s3434_s4 + $0x400] sm:$0xff] }
 0x32e   : > { %v1828_v10 = vld [vmem:[%s3435_s5 + $0x1] ss:$0 sm:$0xff] }
 0x32f   : > { %v1024_v12 = vmax.f32 %v1021_v11, 0.0 }
 0x331   : > { %1025 = vst.msk [vmem:[#allocation3 + $0x1] sm:$0xff] %vm255_vm0, %v1024_v12 }
 0x338   : > { %v1077_v13 = vld [vmem:[#allocation3] sm:$0xff]  ;;  %v1078_v14 = vld [vmem:[#allocation3 + $0x8] sm:$0x3] }
 0x339   : > { %v1081_v15 = vrot.slane %v1077_v13, 1  ;;  %v1082_v16 = vrot.slane %v1078_v14, 1  ;;  %v1085_v17 = vrot.slane %v1077_v13, 2  ;;  %v1086_v18 = vrot.slane %v1078_v14, 2 }
 0x33b   : > { %v1083_v20 = vsel %vm313_vm1, %v1081_v15, %v1082_v16  ;;  %v1087_v21 = vsel %vm321_vm2, %v1085_v17, %v1086_v18 }
 0x33c   : > { %1159 = vmatprep.mubr.f32.mxu1 %v1083_v20  ;;  %2352 = vmatmul.mubr.f32.vlgmr.msra.gmra.mxu0 %v1087_v21 }
 0x33d   : > { %1160 = vmatmul.mubr.f32.vlgmr.msra.gmra.mxu1 %v1077_v13  ;;  %2355 = vmatpush3.msra.mxu0 %v1876_v19 }
 0x33e   : > { %2111 = vmatpush3.msra.mxu1 %v1844_v22  ;;  %2356 = vmatprep.subr.mxu0 %v2455_v5 }
 0x33f   : > { %2112 = vmatprep.subr.mxu1 %v1859_v23  ;;  %2357 = vmatpush3.msra.mxu0 %v1875_v24  ;;  %v1926_v23 = vld [vmem:[%s3434_s4 + $0x5f8] sm:$0xff] }
 0x340   : > { %2113 = vmatpush3.msra.mxu1 %v1843_v25  ;;  %2358 = vmatprep.subr.mxu0 %v2455_v5 }
 0x341   : > { %2114 = vmatprep.subr.mxu1 %v1858_v26  ;;  %2359 = vmatpush3.msra.mxu0 %v1874_v27  ;;  %v1909_v26 = vld [vmem:[%s3434_s4 + $0x570] sm:$0xff] }
 0x342   : > { %2115 = vmatpush3.msra.mxu1 %v1842_v28  ;;  %2360 = vmatprep.subr.mxu0 %v2455_v5  ;;  %v1925_v27 = vld [vmem:[%s3434_s4 + $0x5f0] sm:$0xff] }
 0x343   : > { %2386 = vmatprep.mubr.msk.f32.mxu0 %vm2458_vm5, %v2455_v5  ;;  %2116 = vmatprep.subr.mxu1 %v1857_v29  ;;  %v1893_v28 = vld [vmem:[%s3434_s4 + $0x4f0] sm:$0xff]  ;;  %v1908_v29 = vld [vmem:[%s3434_s4 + $0x568] sm:$0xff] }
 0x344   : > { %2361 = vmatpush3.msra.mxu0 %v1873_v30  ;;  %2117 = vmatpush3.msra.mxu1 %v1841_v31  ;;  %v1924_v30 = vld [vmem:[%s3434_s4 + $0x5e8] sm:$0xff] }
 0x345   : > { %2362 = vmatprep.subr.mxu0 %v2455_v5  ;;  %2118 = vmatprep.subr.mxu1 %v1856_v32  ;;  %v1892_v31 = vld [vmem:[%s3434_s4 + $0x4e8] sm:$0xff]  ;;  %v1907_v32 = vld [vmem:[%s3434_s4 + $0x560] sm:$0xff] }
 0x346   : > { %2363 = vmatpush3.msra.mxu0 %v1872_v33  ;;  %2119 = vmatpush3.msra.mxu1 %v1840_v34  ;;  %v1923_v33 = vld [vmem:[%s3434_s4 + $0x5e0] sm:$0xff] }
 0x347   : > { %2364 = vmatprep.subr.mxu0 %v2455_v5  ;;  %2120 = vmatprep.subr.mxu1 %v1855_v35  ;;  %v1891_v34 = vld [vmem:[%s3434_s4 + $0x4e0] sm:$0xff]  ;;  %v1906_v35 = vld [vmem:[%s3434_s4 + $0x558] sm:$0xff] }
 0x348   : > { %2365 = vmatpush3.msra.mxu0 %v1871_v36  ;;  %2121 = vmatpush3.msra.mxu1 %v1839_v37  ;;  %v1922_v36 = vld [vmem:[%s3434_s4 + $0x5d8] sm:$0xff] }
 0x349   : > { %2366 = vmatprep.subr.mxu0 %v2455_v5  ;;  %2122 = vmatprep.subr.mxu1 %v1854_v38  ;;  %v1890_v37 = vld [vmem:[%s3434_s4 + $0x4d8] sm:$0xff]  ;;  %v1905_v38 = vld [vmem:[%s3434_s4 + $0x550] sm:$0xff] }
 0x34a   : > { %2367 = vmatpush3.msra.mxu0 %v1870_v39  ;;  %2123 = vmatpush3.msra.mxu1 %v1838_v40  ;;  %v1921_v39 = vld [vmem:[%s3434_s4 + $0x5d0] sm:$0xff] }
 0x34b   : > { %2368 = vmatprep.subr.mxu0 %v2455_v5  ;;  %2124 = vmatprep.subr.mxu1 %v1853_v41  ;;  %v1889_v40 = vld [vmem:[%s3434_s4 + $0x4d0] sm:$0xff]  ;;  %v1904_v41 = vld [vmem:[%s3434_s4 + $0x548] sm:$0xff] }
 0x34c   : > { %2369 = vmatpush3.msra.mxu0 %v1869_v42  ;;  %2125 = vmatpush3.msra.mxu1 %v1837_v43  ;;  %v1920_v42 = vld [vmem:[%s3434_s4 + $0x5c8] sm:$0xff] }
 0x34d   : > { %2370 = vmatprep.subr.mxu0 %v2455_v5  ;;  %2126 = vmatprep.subr.mxu1 %v1852_v44  ;;  %v1888_v43 = vld [vmem:[%s3434_s4 + $0x4c8] sm:$0xff]  ;;  %v1903_v44 = vld [vmem:[%s3434_s4 + $0x540] sm:$0xff] }
 0x34e   : > { %2371 = vmatpush3.msra.mxu0 %v1868_v45  ;;  %2127 = vmatpush3.msra.mxu1 %v1836_v46  ;;  %v1919_v45 = vld [vmem:[%s3434_s4 + $0x5c0] sm:$0xff] }
 0x34f   : > { %2372 = vmatprep.subr.mxu0 %v2455_v5  ;;  %2128 = vmatprep.subr.mxu1 %v1851_v47  ;;  %v1887_v46 = vld [vmem:[%s3434_s4 + $0x4c0] sm:$0xff]  ;;  %v1902_v47 = vld [vmem:[%s3434_s4 + $0x538] sm:$0xff] }
 0x350   : > { %2373 = vmatpush3.msra.mxu0 %v1867_v48  ;;  %2129 = vmatpush3.msra.mxu1 %v1835_v49  ;;  %v1918_v48 = vld [vmem:[%s3434_s4 + $0x5b8] sm:$0xff] }
 0x351   : > { %2374 = vmatprep.subr.mxu0 %v2455_v5  ;;  %2130 = vmatprep.subr.mxu1 %v1850_v50  ;;  %v1886_v49 = vld [vmem:[%s3434_s4 + $0x4b8] sm:$0xff]  ;;  %v1901_v50 = vld [vmem:[%s3434_s4 + $0x530] sm:$0xff] }
 0x352   : > { %2375 = vmatpush3.msra.mxu0 %v1866_v51  ;;  %2131 = vmatpush3.msra.mxu1 %v1834_v52  ;;  %v1917_v51 = vld [vmem:[%s3434_s4 + $0x5b0] sm:$0xff] }
 0x353   : > { %2376 = vmatprep.subr.mxu0 %v2455_v5  ;;  %2132 = vmatprep.subr.mxu1 %v1849_v53  ;;  %v1885_v52 = vld [vmem:[%s3434_s4 + $0x4b0] sm:$0xff]  ;;  %v1900_v53 = vld [vmem:[%s3434_s4 + $0x528] sm:$0xff] }
 0x354   : > { %2377 = vmatpush3.msra.mxu0 %v1865_v54  ;;  %2133 = vmatpush3.msra.mxu1 %v1833_v55  ;;  %v1916_v54 = vld [vmem:[%s3434_s4 + $0x5a8] sm:$0xff] }
 0x355   : > { %2378 = vmatprep.subr.mxu0 %v2455_v5  ;;  %2134 = vmatprep.subr.mxu1 %v1848_v56  ;;  %v1884_v55 = vld [vmem:[%s3434_s4 + $0x4a8] sm:$0xff]  ;;  %v1899_v56 = vld [vmem:[%s3434_s4 + $0x520] sm:$0xff] }
 0x356   : > { %2379 = vmatpush3.msra.mxu0 %v1864_v57  ;;  %2135 = vmatpush3.msra.mxu1 %v1832_v58  ;;  %v1915_v57 = vld [vmem:[%s3434_s4 + $0x5a0] sm:$0xff] }
 0x357   : > { %2380 = vmatprep.subr.mxu0 %v2455_v5  ;;  %2136 = vmatprep.subr.mxu1 %v1847_v59  ;;  %v1883_v58 = vld [vmem:[%s3434_s4 + $0x4a0] sm:$0xff]  ;;  %v1898_v59 = vld [vmem:[%s3434_s4 + $0x518] sm:$0xff] }
 0x358   : > { %2381 = vmatpush3.msra.mxu0 %v1863_v60  ;;  %2137 = vmatpush3.msra.mxu1 %v1831_v61  ;;  %v1914_v60 = vld [vmem:[%s3434_s4 + $0x598] sm:$0xff] }
 0x359   : > { %2382 = vmatprep.subr.mxu0 %v2455_v5  ;;  %2138 = vmatprep.subr.mxu1 %v1846_v62  ;;  %v1882_v61 = vld [vmem:[%s3434_s4 + $0x498] sm:$0xff]  ;;  %v1897_v62 = vld [vmem:[%s3434_s4 + $0x510] sm:$0xff] }
 0x35a   : > { %2383 = vmatpush3.msra.mxu0 %v1862_v63  ;;  %2139 = vmatpush3.msra.mxu1 %v1830_v0  ;;  %v1913_v63 = vld [vmem:[%s3434_s4 + $0x590] sm:$0xff] }
 0x35b   : > { %2384 = vmatprep.subr.mxu0 %v2455_v5  ;;  %2140 = vmatprep.subr.mxu1 %v1845_v1  ;;  %v1881_v0 = vld [vmem:[%s3434_s4 + $0x490] sm:$0xff]  ;;  %v1896_v1 = vld [vmem:[%s3434_s4 + $0x508] sm:$0xff] }
 0x35c   : > { %2385 = vmatpush3.msra.mxu0 %v1861_v2  ;;  %2141 = vmatpush3.msra.mxu1 %v1829_v3  ;;  %v1912_v2 = vld [vmem:[%s3434_s4 + $0x588] sm:$0xff] }
 0x35d   : > { %2389 = vmatprep.subr.mxu0 %v2455_v5  ;;  %2162 = vmatprep.subr.mxu1 %v1910_v4  ;;  %v1880_v3 = vld [vmem:[%s3434_s4 + $0x488] sm:$0xff]  ;;  %v1895_v4 = vld [vmem:[%s3434_s4 + $0x500] sm:$0xff] }
 0x3fc   : > { %v1231_v6 = vpop.f32.mrf.mxu0 }
 0x3fd   : > { %v2090_v7 = vpop.f32.mrf.mxu1 }
 0x3fe   : > { %v2353_v8 = vpop.f32.mrf.mxu0 }
 0x3ff   : > { %v2091_v11 = vpop.f32.mrf.mxu1 }
 0x400   : > { %v2092_v12 = vadd.f32 %v2091_v11, %v2090_v7  ;;  %v1879_v7 = vld [vmem:[%s3434_s4 + $0x480] sm:$0xff] }
 0x402   : > { %v1162_v13 = vadd.f32 %v2092_v12, %v1828_v10  ;;  %v1878_v12 = vld [vmem:[%s3435_s5 + $0x2] ss:$0 sm:$0xff] }
 0x404   : > { %v1232_v14 = vadd.f32 %v1231_v6, %v1162_v13  ;;  %v1911_v6 = vld [vmem:[%s3434_s4 + $0x580] sm:$0xff] }
 0x406   : > { %v3248_v15 = vadd.f32 %v2910_v9, %v1232_v14  ;;  %v1894_v9 = vld [vmem:[%s3434_s4 + $0x4f8] sm:$0xff] }
 0x408   : > { %v1284_v16 = vmax.f32 %v3248_v15, 0.0 }
 0x40a   : > { %1285 = vst.msk [vmem:[#allocation3 + $0x1] sm:$0xff] %vm255_vm0, %v1284_v16 }
 0x411   : > { %v1337_v17 = vld [vmem:[#allocation3] sm:$0xff]  ;;  %v1338_v18 = vld [vmem:[#allocation3 + $0x8] sm:$0x3] }
 0x412   : > { %v1341_v19 = vrot.slane %v1337_v17, 1  ;;  %v1342_v20 = vrot.slane %v1338_v18, 1  ;;  %v1345_v21 = vrot.slane %v1337_v17, 2  ;;  %v1346_v22 = vrot.slane %v1338_v18, 2 }
 0x414   : > { %v1343_v24 = vsel %vm313_vm1, %v1341_v19, %v1342_v20  ;;  %v1347_v25 = vsel %vm321_vm2, %v1345_v21, %v1346_v22 }
 0x415   : > { %1419 = vmatprep.mubr.f32.mxu1 %v1343_v24  ;;  %2387 = vmatmul.mubr.f32.vlgmr.msra.gmra.mxu0 %v1347_v25 }
 0x416   : > { %1420 = vmatmul.mubr.f32.vlgmr.msra.gmra.mxu1 %v1337_v17  ;;  %2390 = vmatpush3.msra.mxu0 %v1926_v23 }
 0x417   : > { %2163 = vmatpush3.msra.mxu1 %v1894_v9  ;;  %2391 = vmatprep.subr.mxu0 %v2455_v5 }
 0x418   : > { %2164 = vmatprep.subr.mxu1 %v1909_v26  ;;  %2392 = vmatpush3.msra.mxu0 %v1925_v27 }
 0x419   : > { %2165 = vmatpush3.msra.mxu1 %v1893_v28  ;;  %2393 = vmatprep.subr.mxu0 %v2455_v5  ;;  %v1928_v28 = vld [vmem:[%s3435_s5 + $0x3] ss:$0 sm:$0xff] }
 0x41a   : > { %2166 = vmatprep.subr.mxu1 %v1908_v29  ;;  %2394 = vmatpush3.msra.mxu0 %v1924_v30 }
 0x41b   : > { %2167 = vmatpush3.msra.mxu1 %v1892_v31  ;;  %2395 = vmatprep.subr.mxu0 %v2455_v5 }
 0x41c   : > { %2168 = vmatprep.subr.mxu1 %v1907_v32  ;;  %2396 = vmatpush3.msra.mxu0 %v1923_v33 }
 0x41d   : > { %2169 = vmatpush3.msra.mxu1 %v1891_v34  ;;  %2397 = vmatprep.subr.mxu0 %v2455_v5 }
 0x41e   : > { %2421 = vmatprep.mubr.msk.f32.mxu0 %vm2458_vm5, %v2455_v5  ;;  %2170 = vmatprep.subr.mxu1 %v1906_v35 }
 0x41f   : > { %2398 = vmatpush3.msra.mxu0 %v1922_v36  ;;  %2171 = vmatpush3.msra.mxu1 %v1890_v37 }
 0x420   : > { %2399 = vmatprep.subr.mxu0 %v2455_v5  ;;  %2172 = vmatprep.subr.mxu1 %v1905_v38 }
 0x421   : > { %2400 = vmatpush3.msra.mxu0 %v1921_v39  ;;  %2173 = vmatpush3.msra.mxu1 %v1889_v40 }
 0x422   : > { %2401 = vmatprep.subr.mxu0 %v2455_v5  ;;  %2174 = vmatprep.subr.mxu1 %v1904_v41 }
 0x423   : > { %2402 = vmatpush3.msra.mxu0 %v1920_v42  ;;  %2175 = vmatpush3.msra.mxu1 %v1888_v43 }
 0x424   : > { %2403 = vmatprep.subr.mxu0 %v2455_v5  ;;  %2176 = vmatprep.subr.mxu1 %v1903_v44 }
 0x425   : > { %2404 = vmatpush3.msra.mxu0 %v1919_v45  ;;  %2177 = vmatpush3.msra.mxu1 %v1887_v46 }
 0x426   : > { %2405 = vmatprep.subr.mxu0 %v2455_v5  ;;  %2178 = vmatprep.subr.mxu1 %v1902_v47 }
 0x427   : > { %2406 = vmatpush3.msra.mxu0 %v1918_v48  ;;  %2179 = vmatpush3.msra.mxu1 %v1886_v49 }
 0x428   : > { %2407 = vmatprep.subr.mxu0 %v2455_v5  ;;  %2180 = vmatprep.subr.mxu1 %v1901_v50 }
 0x429   : > { %2408 = vmatpush3.msra.mxu0 %v1917_v51  ;;  %2181 = vmatpush3.msra.mxu1 %v1885_v52 }
 0x42a   : > { %2409 = vmatprep.subr.mxu0 %v2455_v5  ;;  %2182 = vmatprep.subr.mxu1 %v1900_v53 }
 0x42b   : > { %2410 = vmatpush3.msra.mxu0 %v1916_v54  ;;  %2183 = vmatpush3.msra.mxu1 %v1884_v55 }
 0x42c   : > { %2411 = vmatprep.subr.mxu0 %v2455_v5  ;;  %2184 = vmatprep.subr.mxu1 %v1899_v56 }
 0x42d   : > { %2412 = vmatpush3.msra.mxu0 %v1915_v57  ;;  %2185 = vmatpush3.msra.mxu1 %v1883_v58 }
 0x42e   : > { %2413 = vmatprep.subr.mxu0 %v2455_v5  ;;  %2186 = vmatprep.subr.mxu1 %v1898_v59 }
 0x42f   : > { %2414 = vmatpush3.msra.mxu0 %v1914_v60  ;;  %2187 = vmatpush3.msra.mxu1 %v1882_v61 }
 0x430   : > { %2415 = vmatprep.subr.mxu0 %v2455_v5  ;;  %2188 = vmatprep.subr.mxu1 %v1897_v62 }
 0x431   : > { %2416 = vmatpush3.msra.mxu0 %v1913_v63  ;;  %2189 = vmatpush3.msra.mxu1 %v1881_v0 }
 0x432   : > { %2417 = vmatprep.subr.mxu0 %v2455_v5  ;;  %2190 = vmatprep.subr.mxu1 %v1896_v1 }
 0x433   : > { %2418 = vmatpush3.msra.mxu0 %v1912_v2  ;;  %2191 = vmatpush3.msra.mxu1 %v1880_v3 }
 0x434   : > { %2419 = vmatprep.subr.mxu0 %v2455_v5  ;;  %2192 = vmatprep.subr.mxu1 %v1895_v4 }
 0x435   : > { %2420 = vmatpush3.msra.mxu0 %v1911_v6  ;;  %2193 = vmatpush3.msra.mxu1 %v1879_v7 }
 0x4d5   : > { %v1491_v8 = vpop.f32.mrf.mxu0 }
 0x4d6   : > { %v2142_v10 = vpop.f32.mrf.mxu1 }
 0x4d7   : > { %v2388_v11 = vpop.f32.mrf.mxu0 }
 0x4d8   : > { %v2143_v13 = vpop.f32.mrf.mxu1 }
 0x4d9   : > { %v2144_v14 = vadd.f32 %v2143_v13, %v2142_v10 }
 0x4db   : > { %v1422_v16 = vadd.f32 %v2144_v14, %v1878_v12 }
 0x4dd   : > { %v1492_v17 = vadd.f32 %v1491_v8, %v1422_v16 }
 0x4df   : > { %v1495_v18 = vmax.f32 %v1492_v17, 0.0 }
 0x4e1   : > { %1496 = vst.msk [vmem:[#allocation3 + $0x1] sm:$0xff] %vm255_vm0, %v1495_v18 }
 0x4e8   : > { %v1548_v19 = vld [vmem:[#allocation3] sm:$0xff]  ;;  %v1549_v20 = vld [vmem:[#allocation3 + $0x8] sm:$0x3] }
 0x4e9   : > { %v1552_v5 = vrot.slane %v1548_v19, 1  ;;  %v1553_v21 = vrot.slane %v1549_v20, 1  ;;  %v1556_v22 = vrot.slane %v1548_v19, 2  ;;  %v1557_v23 = vrot.slane %v1549_v20, 2 }
 0x4eb   : > { %v1554_v24 = vsel %vm313_vm1, %v1552_v5, %v1553_v21  ;;  %v1558_v25 = vsel %vm321_vm2, %v1556_v22, %v1557_v23 }
 0x4ec   : > { %1630 = vmatprep.mubr.f32.mxu1 %v1554_v24  ;;  %2422 = vmatmul.mubr.f32.vlgmr.msra.gmra.mxu0 %v1558_v25 }
 0x4ed   : > { %1631 = vmatmul.mubr.f32.vlgmr.msra.gmra.mxu1 %v1548_v19 }
 0x5ac   : > { %v1702_v9 = vpop.f32.mrf.mxu0 }
 0x5ad   : > { %v2194_v26 = vpop.f32.mrf.mxu1 }
 0x5ae   : > { %v2423_v27 = vpop.f32.mrf.mxu0 }
 0x5af   : > { %v2195_v29 = vpop.f32.mrf.mxu1 }
 0x5b0   : > { %v2196_v30 = vadd.f32 %v2195_v29, %v2194_v26 }
 0x5b2   : > { %v1633_v31 = vadd.f32 %v2196_v30, %v1928_v28 }
 0x5b4   : > { %v1703_v32 = vadd.f32 %v1702_v9, %v1633_v31 }
 0x5b6   : > { %v1706_v33 = vadd.f32 %v1703_v32, %v3248_v15 }
 0x5b8   : > { %1707 = vst.msk [vmem:[%s249_s27] sm:$0xff] %vm255_vm0, %v1706_v33 }
 0x5b9 PF: > { %s16_s21 = sadd.s32 1, %s2453_s21  }
 0x5ba   : > { %p13_p4 = scmp.ge.s32.totalorder %s16_s21, 4  }
 0x5bc   :  { %15 = sbr.rel (!%p13_p4) target bundleno = 1 (0x1), region = 80 }

</bundles_post_ra>
